<compile_context>
chip_gen: v7x
topology: tpu7x:2x2x1
jax: 0.10.0
libtpu: 0.0.40
codegen_flags: <defaults>
</compile_context>

<pallas_src>
import jax
import jax.numpy as jnp
import numpy as np
from jax.experimental import pallas as pl
from jax.experimental.pallas import tpu as pltpu  # noqa: F401  (TPU backend)

_EPS = 1e-5


def _dynamics_kernel(x_ref, act_ref, wl_ref, bl_ref, wp_ref, wa_ref, pv_ref,
                     hc_ref, head_ref):
    """Fused eval-mode Dynamics forward (BatchNorm folded into layer-0 weights).

    x_ref  : (S, B, H)      time-major, feature-zero-padded raw state
    act_ref: (B, A)         action (first timestep)
    wl_ref : (2S-1, 2H, 4H) stacked [w_ih ; w_hh] per LSTM "cell class":
                            rows 0..S-1  = layer 0 at timestep t (BN scale folded),
                            rows S..2S-2 = layers 1..S-1 (timestep invariant)
    bl_ref : (2S-1, 4H)     matching gate biases (b_ih+b_hh; BN shift folded
                            into the layer-0 rows)
    wp_ref : (3, 2H, HP)    [w1 (2H,H) | w2 (H,H) row-pad | [ws|wr] (H,DF+F) row-pad],
                            columns zero-padded to HP (lane-dense)
    wa_ref : (A, H)         linear_action weight
    pv_ref : (8, HP)        [ba, b1, g1, be1, b2, g2, be2, [bs|br]] zero-padded
    hc_ref : (B, 2*S*H)     packed [h_0..h_{S-1}, c_0..c_{S-1}]
    head_ref:(B, HP)        packed [linear_state | linear_reward] outputs
    """
    S, B, H = x_ref.shape
    f32 = jnp.float32
    wdt = wl_ref.dtype                       # bf16 (default) or f32
    cast = lambda a: a.astype(wdt)           # matmul-operand cast only

    # ---- linear_action (independent of the LSTM recurrence) -----------------
    ba = pv_ref[0:1, 0:H]
    act = jnp.dot(cast(act_ref[...]), wa_ref[...],
                  preferred_element_type=f32) + ba                     # (B, H)

    # ---- multi-layer LSTM, wavefront over (layer, time) anti-diagonals ------
    # num_layers == sequence_num == S, zero (h0, c0).  Each cell is one MXU
    # push: gates = [x_t ; h] @ [w_ih ; w_hh] + b.  Cell (l, t) depends only on
    # (l, t-1) and (l-1, t), so the serial chain is 2S-1 diagonals instead of
    # S*S cells; cells on the same diagonal are independent and their MXU /
    # EUP / VPU work interleaves across VLIW slots.
    h = [jnp.zeros((B, H), f32) for _ in range(S)]
    c = [jnp.zeros((B, H), f32) for _ in range(S)]
    for d in range(2 * S - 1):
        h_below = list(h)                    # snapshot: below-layer h from diagonal d-1
        for l in range(max(0, d - S + 1), min(S - 1, d) + 1):
            t = d - l
            if l == 0:
                xin = x_ref[t]               # (B, H) raw state; BN folded into wl_ref[t]
                wi = t
            else:
                xin = h_below[l - 1]         # below-layer output at timestep t
                wi = S + l - 1
            zin = jnp.concatenate([cast(xin), cast(h[l])], axis=-1)    # (B, 2H)
            gates = (jnp.dot(zin, wl_ref[wi], preferred_element_type=f32)
                     + bl_ref[wi:wi + 1, :])                           # (B, 4H)
            sig = jax.nn.sigmoid(gates)      # one EUP pass covers i, f, o
            tnh = jnp.tanh(gates)            # one EUP pass covers g
            # TODO(synk): if the Mosaic dump shows per-cell cross-lane shifts
            # from the 32-lane gate extracts, realign with pltpu.roll (XLU).
            c[l] = sig[:, H:2 * H] * c[l] + sig[:, 0:H] * tnh[:, 2 * H:3 * H]
            h[l] = sig[:, 3 * H:4 * H] * jnp.tanh(c[l])
    # TODO(synk): for large sequence_num, switch this unrolled diagonal loop to
    # lax.fori_loop(..., unroll=True) over (S, B, H) carried state to bound
    # code size and vreg live ranges.

    h_last = h[S - 1]                        # == lstm output x[:, -1, :]

    # ---- post (Dropout(0.1) is identity in eval mode) -----------------------
    def ln_relu(y, g, b):
        mu = jnp.mean(y, axis=-1, keepdims=True)
        var = jnp.mean((y - mu) ** 2, axis=-1, keepdims=True)
        return jnp.maximum((y - mu) * jax.lax.rsqrt(var + _EPS) * g + b, 0.0)

    b1, g1, be1 = pv_ref[1:2, 0:H], pv_ref[2:3, 0:H], pv_ref[3:4, 0:H]
    b2, g2, be2 = pv_ref[4:5, 0:H], pv_ref[5:6, 0:H], pv_ref[6:7, 0:H]

    # cat([h_last, act]) @ W1 as a single lane-concat + one MXU push.
    z = jnp.concatenate([cast(h_last), cast(act)], axis=-1)            # (B, 2H)
    y = jnp.dot(z, wp_ref[0], preferred_element_type=f32)[:, 0:H] + b1
    y = ln_relu(y, g1, be1)
    y = jnp.dot(cast(y), wp_ref[1][0:H, :],
                preferred_element_type=f32)[:, 0:H] + b2
    y = ln_relu(y, g2, be2)

    # ---- fused heads: [linear_state | linear_reward] -> one lane-dense store
    head_ref[...] = (jnp.dot(cast(y), wp_ref[2][0:H, :],
                             preferred_element_type=f32) + pv_ref[7:8, :])

    # ---- (h, c) packed into one lane-dense slab ------------------------------
    hc_ref[...] = jnp.concatenate(h + c, axis=-1)


def init_params(key, state_dim, action_dim, hidden, seq, future):
    """Deterministic synthetic parameters (shapes follow Dynamics.__init__);
    linear / LSTM weights are stored pre-transposed as (in, out)."""
    ks = jax.random.split(key, 23)
    w = lambda k, shape, s=0.1: (s * jax.random.normal(k, shape)).astype(jnp.float32)
    H = hidden
    return {
        # BatchNorm1d(state_dim * seq): eval-mode running stats, shaped (seq, D)
        'bn_gamma': 1.0 + w(ks[0], (seq, state_dim)),
        'bn_beta': w(ks[1], (seq, state_dim)),
        'bn_mean': w(ks[2], (seq, state_dim)),
        'bn_var': 1.0 + jnp.abs(w(ks[3], (seq, state_dim))),
        # LSTM (num_layers = seq)
        'w_ih0': w(ks[4], (state_dim, 4 * H)),
        'w_ih': w(ks[5], (seq - 1, H, 4 * H)),
        'w_hh': w(ks[6], (seq, H, 4 * H)),
        'b_ih': w(ks[7], (seq, 4 * H)),
        'b_hh': w(ks[8], (seq, 4 * H)),
        # linear_action
        'wa': w(ks[9], (action_dim, H)), 'ba': w(ks[10], (H,)),
        # post
        'w1': w(ks[11], (2 * H, H)), 'b1': w(ks[12], (H,)),
        'g1': 1.0 + w(ks[13], (H,)), 'be1': w(ks[14], (H,)),
        'w2': w(ks[15], (H, H)), 'b2': w(ks[16], (H,)),
        'g2': 1.0 + w(ks[17], (H,)), 'be2': w(ks[18], (H,)),
        # heads
        'ws': w(ks[19], (H, state_dim * future)), 'bs': w(ks[20], (state_dim * future,)),
        'wr': w(ks[21], (H, future)), 'br': w(ks[22], (future,)),
    }


def pack_params(p, *, weight_dtype=jnp.bfloat16):
    """Pack the ~25 small parameter arrays into 5 DMA-friendly arrays.

    Eval-mode BatchNorm is folded into the per-timestep layer-0 LSTM weights
    and biases, so no BN data (and no batch-replicated rows) are shipped."""
    D = p['w_ih0'].shape[0]
    S, H, _ = p['w_hh'].shape
    DF = p['ws'].shape[1]
    F = p['wr'].shape[1]
    assert D <= H, "packing assumes state_dim <= hidden_dim"
    HP = -(-max(H, DF + F) // 128) * 128        # lane-dense padded width
    f32 = jnp.float32

    # ---- fold BN(eval) into layer-0:  xn_t = x_t*scale_t + shift_t  ----------
    scale = p['bn_gamma'] * jax.lax.rsqrt(p['bn_var'] + _EPS)           # (S, D)
    shift = p['bn_beta'] - p['bn_mean'] * scale                         # (S, D)
    w_ih0_t = scale[:, :, None] * p['w_ih0'][None, :, :]                # (S, D, 4H)
    w_ih0_t = jnp.pad(w_ih0_t, ((0, 0), (0, H - D), (0, 0)))            # (S, H, 4H)
    b0_t = shift @ p['w_ih0'] + (p['b_ih'][0] + p['b_hh'][0])[None, :]  # (S, 4H)

    # ---- stacked per-cell [w_ih ; w_hh] tiles (single dot per LSTM cell) -----
    # rows 0..S-1  : layer 0, timestep t (w_hh[0] replicated -> contiguous tile)
    # rows S..2S-2 : layer l = 1..S-1
    w_hh0 = jnp.broadcast_to(p['w_hh'][0][None], (S, H, 4 * H))
    wl0 = jnp.concatenate([w_ih0_t, w_hh0], axis=1)                     # (S, 2H, 4H)
    wl_up = jnp.concatenate([p['w_ih'], p['w_hh'][1:]], axis=1)         # (S-1, 2H, 4H)
    w_lstm = jnp.concatenate([wl0, wl_up], axis=0)                      # (2S-1, 2H, 4H)
    b_up = p['b_ih'][1:] + p['b_hh'][1:]                                # (S-1, 4H)
    lstm_b = jnp.concatenate([b0_t, b_up], axis=0).astype(f32)          # (2S-1, 4H)

    # ---- post + fused heads, columns zero-padded to HP (lane-dense) ----------
    pad_c = lambda w: jnp.pad(w, ((0, 0), (0, HP - w.shape[1])))
    pad_r = lambda w: jnp.pad(w, ((0, 2 * H - w.shape[0]), (0, 0)))
    w_head = jnp.concatenate([p['ws'], p['wr']], axis=1)                # (H, DF+F)
    w_post = jnp.stack([pad_c(p['w1']),
                        pad_r(pad_c(p['w2'])),
                        pad_r(pad_c(w_head))])                          # (3, 2H, HP)

    pad_v = lambda v: jnp.pad(v.astype(f32), (0, HP - v.shape[0]))
    p_vec = jnp.stack([pad_v(p['ba']), pad_v(p['b1']), pad_v(p['g1']),
                       pad_v(p['be1']), pad_v(p['b2']), pad_v(p['g2']),
                       pad_v(p['be2']),
                       pad_v(jnp.concatenate([p['bs'], p['br']]))])     # (8, HP)

    return {'w_lstm': w_lstm.astype(weight_dtype),
            'lstm_b': lstm_b,
            'w_post': w_post.astype(weight_dtype),
            'wa': p['wa'].astype(weight_dtype),
            'p_vec': p_vec}


def dynamics_forward(state, action, params, *, weight_dtype=jnp.bfloat16,
                     next_state=None, next_reward=None):
    """Mirrors Dynamics.forward(state, action) -> (s_, r_, (h, c), loss)."""
    # TODO(synk): non-zero initial LSTM state (hc_in) path not implemented;
    # only the default zero-init call used by SeqModel is covered.
    B, S, D = state.shape
    H = params['w_hh'].shape[1]
    F = params['wr'].shape[1]
    DF = params['ws'].shape[1]
    pk = pack_params(params, weight_dtype=weight_dtype)
    HP = pk['w_post'].shape[2]

    # Layout plumbing only: time-major, feature-zero-padded raw state; the
    # eval-mode BatchNorm already lives inside the layer-0 LSTM weights.
    x3 = jnp.pad(jnp.transpose(state, (1, 0, 2)),
                 ((0, 0), (0, 0), (0, H - D))).astype(jnp.float32)      # (S, B, H)

    out_shapes = (
        jax.ShapeDtypeStruct((B, 2 * S * H), jnp.float32),   # [h_0..h_L, c_0..c_L]
        jax.ShapeDtypeStruct((B, HP), jnp.float32),          # [state head | reward head]
    )
    # Whole problem is a few hundred KB -> grid=(), full-array VMEM blocks.
    # TODO(synk): for large batch add a batch grid axis with batch-blocked
    # BlockSpecs and dimension_semantics=("parallel",) (second v7x TensorCore,
    # 64 MiB VMEM) and raise vmem_limit_bytes via pltpu.CompilerParams as B
    # grows on v5e/v6e before blocking there.
    hc, head = pl.pallas_call(_dynamics_kernel, out_shape=out_shapes)(
        x3, action.astype(jnp.float32), pk['w_lstm'], pk['lstm_b'],
        pk['w_post'], pk['wa'], pk['p_vec'])

    hc = hc.reshape(B, 2, S, H)
    h = jnp.transpose(hc[:, 0], (1, 0, 2))                   # (num_layers, B, H)
    c = jnp.transpose(hc[:, 1], (1, 0, 2))
    s_ = head[:, :DF].reshape(B, F, D)
    r_ = head[:, DF:DF + F].reshape(B, F, 1)
    loss = None
    if next_state is not None and next_reward is not None:
        # Exactly the module's reduction: per-sample sum, then batch mean.
        loss = (((s_ - next_state) ** 2).reshape(B, -1).sum(-1).mean()
                + ((r_ - next_reward) ** 2).reshape(B, -1).sum(-1).mean())
    return s_, r_, (h, c), loss


def seq_model_forward(state, action_seq, params, *, weight_dtype=jnp.bfloat16,
                      next_state=None, next_reward=None):
    """SeqModel.forward with use_gru_update=False: Dynamics on action_seq[:, 0]."""
    # TODO(synk): the use_gru_update=True refinement branch (GRU_update) and
    # training-mode BatchNorm/Dropout statistics are out of scope.
    s_, r_, hc, loss1 = dynamics_forward(state, action_seq[:, 0], params,
                                         weight_dtype=weight_dtype,
                                         next_state=next_state,
                                         next_reward=next_reward)
    return s_, r_, hc, loss1, None


def reference_forward(state, action, p):
    """Pure-JAX f32 reference with the module's structure (explicit BN ->
    per-timestep LSTM -> concat -> post -> separate heads)."""
    B, S, D = state.shape
    H = p['w_hh'].shape[1]
    F = p['wr'].shape[1]
    dot = lambda a, w: jnp.dot(a, w, preferred_element_type=jnp.float32)

    xn = (state - p['bn_mean'][None]) * jax.lax.rsqrt(p['bn_var'][None] + _EPS)
    xn = xn * p['bn_gamma'][None] + p['bn_beta'][None]

    seq = xn
    h_all, c_all = [], []
    for l in range(S):
        w_ih = p['w_ih0'] if l == 0 else p['w_ih'][l - 1]
        w_hh = p['w_hh'][l]
        b = (p['b_ih'][l] + p['b_hh'][l])[None, :]
        h = jnp.zeros((B, H), jnp.float32)
        c = jnp.zeros((B, H), jnp.float32)
        outs = []
        for t in range(S):
            g = dot(seq[:, t, :], w_ih) + dot(h, w_hh) + b
            i_g = jax.nn.sigmoid(g[:, :H]); f_g = jax.nn.sigmoid(g[:, H:2 * H])
            g_g = jnp.tanh(g[:, 2 * H:3 * H]); o_g = jax.nn.sigmoid(g[:, 3 * H:])
            c = f_g * c + i_g * g_g
            h = o_g * jnp.tanh(c)
            outs.append(h)
        seq = jnp.stack(outs, axis=1)
        h_all.append(h); c_all.append(c)

    x = seq[:, -1, :]
    act = dot(action, p['wa']) + p['ba'][None, :]
    z = jnp.concatenate([x, act], axis=1)

    def lnrelu(y, g, b):
        mu = y.mean(-1, keepdims=True)
        var = ((y - mu) ** 2).mean(-1, keepdims=True)
        return jnp.maximum((y - mu) * jax.lax.rsqrt(var + _EPS) * g[None] + b[None], 0.0)

    y = lnrelu(dot(z, p['w1']) + p['b1'][None], p['g1'], p['be1'])
    y = lnrelu(dot(y, p['w2']) + p['b2'][None], p['g2'], p['be2'])
    s = dot(y, p['ws']) + p['bs'][None]
    r = dot(y, p['wr']) + p['br'][None]
    return (s.reshape(B, F, D), r.reshape(B, F, 1),
            (jnp.stack(h_all, axis=0), jnp.stack(c_all, axis=0)))


if __name__ == "__main__":
    # Small shapes consistent with the module:
    # batch=2, seq(=num LSTM layers)=4, state_dim=4, action_dim=3, hidden=32, future=3
    B, S, D, A, H, F = 2, 4, 4, 3, 32, 3
    key = jax.random.PRNGKey(0)
    k1, k2, k3, k4, k5 = jax.random.split(key, 5)
    state = jax.random.normal(k1, (B, S, D), jnp.float32)
    action_seq = jax.random.normal(k2, (B, S + F - 1, A), jnp.float32)
    params = init_params(k3, D, A, H, S, F)
    next_state = jax.random.normal(k4, (B, F, D), jnp.float32)
    next_reward = jax.random.normal(k5, (B, F, 1), jnp.float32)

    # 1) f32-weight run: structural check against the plain-f32 module math.
    s32, r32, (h32, c32), loss32, _ = seq_model_forward(
        state, action_seq, params, weight_dtype=jnp.float32,
        next_state=next_state, next_reward=next_reward)
    jax.block_until_ready((s32, r32, h32, c32, loss32))
    s_ref, r_ref, (h_ref, c_ref) = reference_forward(state, action_seq[:, 0], params)
    assert s32.shape == (B, F, D) and r32.shape == (B, F, 1)
    assert h32.shape == (S, B, H) and c32.shape == (S, B, H)
    np.testing.assert_allclose(np.asarray(s32), np.asarray(s_ref), rtol=1e-4, atol=1e-4)
    np.testing.assert_allclose(np.asarray(r32), np.asarray(r_ref), rtol=1e-4, atol=1e-4)
    np.testing.assert_allclose(np.asarray(h32), np.asarray(h_ref), rtol=1e-4, atol=1e-4)
    np.testing.assert_allclose(np.asarray(c32), np.asarray(c_ref), rtol=1e-4, atol=1e-4)
    l_ref = (((s_ref - next_state) ** 2).reshape(B, -1).sum(-1).mean()
             + ((r_ref - next_reward) ** 2).reshape(B, -1).sum(-1).mean())
    np.testing.assert_allclose(float(loss32), float(l_ref), rtol=1e-4, atol=1e-4)
    assert np.isfinite(float(loss32))

    # 2) bf16-weight run (default fast path): bf16 only as MXU operands, all
    #    carries/statistics in f32 -> loose check against the f32 reference.
    sbf, rbf, (hbf, cbf), _, _ = seq_model_forward(state, action_seq, params)
    jax.block_until_ready((sbf, rbf, hbf, cbf))
    np.testing.assert_allclose(np.asarray(sbf), np.asarray(s_ref), rtol=3e-2, atol=3e-2)
    np.testing.assert_allclose(np.asarray(rbf), np.asarray(r_ref), rtol=3e-2, atol=3e-2)
    np.testing.assert_allclose(np.asarray(hbf), np.asarray(h_ref), rtol=3e-2, atol=3e-2)
    np.testing.assert_allclose(np.asarray(cbf), np.asarray(c_ref), rtol=3e-2, atol=3e-2)
    rel = (np.linalg.norm(np.asarray(sbf) - np.asarray(s_ref))
           / max(float(np.linalg.norm(np.asarray(s_ref))), 1e-6))
    assert rel < 0.1

    print("KERNEL_OK")
</pallas_src>

<mosaic_0001>
module attributes {stable_mosaic.version = 11 : i64} {
  func.func @_dynamics_kernel(%arg0: memref<4x2x32xf32, #tpu.memory_space<vmem>>, %arg1: memref<2x3xf32, #tpu.memory_space<vmem>>, %arg2: memref<7x64x128xf32, #tpu.memory_space<vmem>>, %arg3: memref<7x128xf32, #tpu.memory_space<vmem>>, %arg4: memref<3x64x128xf32, #tpu.memory_space<vmem>>, %arg5: memref<3x32xf32, #tpu.memory_space<vmem>>, %arg6: memref<8x128xf32, #tpu.memory_space<vmem>>, %arg7: memref<2x256xf32, #tpu.memory_space<vmem>>, %arg8: memref<2x128xf32, #tpu.memory_space<vmem>>) attributes {dimension_semantics = [], scalar_prefetch = 0 : i64, scratch_operands = 0 : i64, tpu.core_type = #tpu.core_type<tc>} {
    %c0 = arith.constant 0 : index
    %c0_0 = arith.constant 0 : index
    %0 = vector.load %arg6[%c0, %c0_0] : memref<8x128xf32, #tpu.memory_space<vmem>>, vector<1x32xf32>
    %c0_1 = arith.constant 0 : index
    %c0_2 = arith.constant 0 : index
    %1 = vector.load %arg1[%c0_1, %c0_2] : memref<2x3xf32, #tpu.memory_space<vmem>>, vector<2x3xf32>
    %c0_3 = arith.constant 0 : index
    %c0_4 = arith.constant 0 : index
    %2 = vector.load %arg5[%c0_3, %c0_4] : memref<3x32xf32, #tpu.memory_space<vmem>>, vector<3x32xf32>
    %cst = arith.constant dense<0.000000e+00> : vector<2x32xf32>
    %3 = tpu.matmul %1, %2, %cst {dimension_numbers = #tpu.dot_dimension_numbers<[1], [0], [0], [1], [0, 0, 1, 1], [], []>} : vector<2x3xf32>, vector<3x32xf32>, vector<2x32xf32> -> vector<2x32xf32>
    %4 = vector.broadcast %0 : vector<1x32xf32> to vector<2x32xf32>
    %5 = arith.addf %3, %4 : vector<2x32xf32>
    %cst_5 = arith.constant 0.000000e+00 : f32
    %6 = vector.broadcast %cst_5 : f32 to vector<2x32xf32>
    %cst_6 = arith.constant 0.000000e+00 : f32
    %7 = vector.broadcast %cst_6 : f32 to vector<2x32xf32>
    %cst_7 = arith.constant 0.000000e+00 : f32
    %8 = vector.broadcast %cst_7 : f32 to vector<2x32xf32>
    %cst_8 = arith.constant 0.000000e+00 : f32
    %9 = vector.broadcast %cst_8 : f32 to vector<2x32xf32>
    %cst_9 = arith.constant 0.000000e+00 : f32
    %10 = vector.broadcast %cst_9 : f32 to vector<2x32xf32>
    %cst_10 = arith.constant 0.000000e+00 : f32
    %11 = vector.broadcast %cst_10 : f32 to vector<2x32xf32>
    %cst_11 = arith.constant 0.000000e+00 : f32
    %12 = vector.broadcast %cst_11 : f32 to vector<2x32xf32>
    %cst_12 = arith.constant 0.000000e+00 : f32
    %13 = vector.broadcast %cst_12 : f32 to vector<2x32xf32>
    %c0_13 = arith.constant 0 : index
    %c0_14 = arith.constant 0 : index
    %c0_15 = arith.constant 0 : index
    %14 = vector.load %arg0[%c0_13, %c0_14, %c0_15] : memref<4x2x32xf32, #tpu.memory_space<vmem>>, vector<1x2x32xf32>
    %15 = vector.shape_cast %14 : vector<1x2x32xf32> to vector<2x32xf32>
    %16 = tpu.concatenate %15, %6 in 1 : vector<2x32xf32>, vector<2x32xf32> -> vector<2x64xf32>
    %c0_16 = arith.constant 0 : index
    %c0_17 = arith.constant 0 : index
    %c0_18 = arith.constant 0 : index
    %17 = vector.load %arg2[%c0_16, %c0_17, %c0_18] : memref<7x64x128xf32, #tpu.memory_space<vmem>>, vector<1x64x128xf32>
    %18 = vector.shape_cast %17 : vector<1x64x128xf32> to vector<64x128xf32>
    %cst_19 = arith.constant dense<0.000000e+00> : vector<2x128xf32>
    %19 = tpu.matmul %16, %18, %cst_19 {dimension_numbers = #tpu.dot_dimension_numbers<[1], [0], [0], [1], [0, 0, 1, 1], [], []>} : vector<2x64xf32>, vector<64x128xf32>, vector<2x128xf32> -> vector<2x128xf32>
    %c0_20 = arith.constant 0 : index
    %c0_21 = arith.constant 0 : index
    %20 = vector.load %arg3[%c0_20, %c0_21] : memref<7x128xf32, #tpu.memory_space<vmem>>, vector<1x128xf32>
    %21 = vector.broadcast %20 : vector<1x128xf32> to vector<2x128xf32>
    %22 = arith.addf %19, %21 : vector<2x128xf32>
    %23 = arith.negf %22 : vector<2x128xf32>
    %24 = math.exp %23 : vector<2x128xf32>
    %cst_22 = arith.constant 1.000000e+00 : f32
    %25 = vector.broadcast %cst_22 : f32 to vector<2x128xf32>
    %26 = arith.addf %25, %24 : vector<2x128xf32>
    %27 = arith.divf %25, %26 : vector<2x128xf32>
    %28 = math.tanh %22 : vector<2x128xf32>
    %29 = vector.extract_strided_slice %27 {offsets = [0, 32], sizes = [2, 32], strides = [1, 1]} : vector<2x128xf32> to vector<2x32xf32>
    %30 = arith.mulf %29, %10 : vector<2x32xf32>
    %31 = vector.extract_strided_slice %27 {offsets = [0, 0], sizes = [2, 32], strides = [1, 1]} : vector<2x128xf32> to vector<2x32xf32>
    %32 = vector.extract_strided_slice %28 {offsets = [0, 64], sizes = [2, 32], strides = [1, 1]} : vector<2x128xf32> to vector<2x32xf32>
    %33 = arith.mulf %31, %32 : vector<2x32xf32>
    %34 = arith.addf %30, %33 : vector<2x32xf32>
    %35 = vector.extract_strided_slice %27 {offsets = [0, 96], sizes = [2, 32], strides = [1, 1]} : vector<2x128xf32> to vector<2x32xf32>
    %36 = math.tanh %34 : vector<2x32xf32>
    %37 = arith.mulf %35, %36 : vector<2x32xf32>
    %c1 = arith.constant 1 : index
    %c0_23 = arith.constant 0 : index
    %c0_24 = arith.constant 0 : index
    %38 = vector.load %arg0[%c1, %c0_23, %c0_24] : memref<4x2x32xf32, #tpu.memory_space<vmem>>, vector<1x2x32xf32>
    %39 = vector.shape_cast %38 : vector<1x2x32xf32> to vector<2x32xf32>
    %40 = tpu.concatenate %39, %37 in 1 : vector<2x32xf32>, vector<2x32xf32> -> vector<2x64xf32>
    %c1_25 = arith.constant 1 : index
    %c0_26 = arith.constant 0 : index
    %c0_27 = arith.constant 0 : index
    %41 = vector.load %arg2[%c1_25, %c0_26, %c0_27] : memref<7x64x128xf32, #tpu.memory_space<vmem>>, vector<1x64x128xf32>
    %42 = vector.shape_cast %41 : vector<1x64x128xf32> to vector<64x128xf32>
    %cst_28 = arith.constant dense<0.000000e+00> : vector<2x128xf32>
    %43 = tpu.matmul %40, %42, %cst_28 {dimension_numbers = #tpu.dot_dimension_numbers<[1], [0], [0], [1], [0, 0, 1, 1], [], []>} : vector<2x64xf32>, vector<64x128xf32>, vector<2x128xf32> -> vector<2x128xf32>
    %c1_29 = arith.constant 1 : index
    %c0_30 = arith.constant 0 : index
    %44 = vector.load %arg3[%c1_29, %c0_30] : memref<7x128xf32, #tpu.memory_space<vmem>>, vector<1x128xf32>
    %45 = vector.broadcast %44 : vector<1x128xf32> to vector<2x128xf32>
    %46 = arith.addf %43, %45 : vector<2x128xf32>
    %47 = arith.negf %46 : vector<2x128xf32>
    %48 = math.exp %47 : vector<2x128xf32>
    %cst_31 = arith.constant 1.000000e+00 : f32
    %49 = vector.broadcast %cst_31 : f32 to vector<2x128xf32>
    %50 = arith.addf %49, %48 : vector<2x128xf32>
    %51 = arith.divf %49, %50 : vector<2x128xf32>
    %52 = math.tanh %46 : vector<2x128xf32>
    %53 = vector.extract_strided_slice %51 {offsets = [0, 32], sizes = [2, 32], strides = [1, 1]} : vector<2x128xf32> to vector<2x32xf32>
    %54 = arith.mulf %53, %34 : vector<2x32xf32>
    %55 = vector.extract_strided_slice %51 {offsets = [0, 0], sizes = [2, 32], strides = [1, 1]} : vector<2x128xf32> to vector<2x32xf32>
    %56 = vector.extract_strided_slice %52 {offsets = [0, 64], sizes = [2, 32], strides = [1, 1]} : vector<2x128xf32> to vector<2x32xf32>
    %57 = arith.mulf %55, %56 : vector<2x32xf32>
    %58 = arith.addf %54, %57 : vector<2x32xf32>
    %59 = vector.extract_strided_slice %51 {offsets = [0, 96], sizes = [2, 32], strides = [1, 1]} : vector<2x128xf32> to vector<2x32xf32>
    %60 = math.tanh %58 : vector<2x32xf32>
    %61 = arith.mulf %59, %60 : vector<2x32xf32>
    %62 = tpu.concatenate %37, %7 in 1 : vector<2x32xf32>, vector<2x32xf32> -> vector<2x64xf32>
    %c4 = arith.constant 4 : index
    %c0_32 = arith.constant 0 : index
    %c0_33 = arith.constant 0 : index
    %63 = vector.load %arg2[%c4, %c0_32, %c0_33] : memref<7x64x128xf32, #tpu.memory_space<vmem>>, vector<1x64x128xf32>
    %64 = vector.shape_cast %63 : vector<1x64x128xf32> to vector<64x128xf32>
    %cst_34 = arith.constant dense<0.000000e+00> : vector<2x128xf32>
    %65 = tpu.matmul %62, %64, %cst_34 {dimension_numbers = #tpu.dot_dimension_numbers<[1], [0], [0], [1], [0, 0, 1, 1], [], []>} : vector<2x64xf32>, vector<64x128xf32>, vector<2x128xf32> -> vector<2x128xf32>
    %c4_35 = arith.constant 4 : index
    %c0_36 = arith.constant 0 : index
    %66 = vector.load %arg3[%c4_35, %c0_36] : memref<7x128xf32, #tpu.memory_space<vmem>>, vector<1x128xf32>
    %67 = vector.broadcast %66 : vector<1x128xf32> to vector<2x128xf32>
    %68 = arith.addf %65, %67 : vector<2x128xf32>
    %69 = arith.negf %68 : vector<2x128xf32>
    %70 = math.exp %69 : vector<2x128xf32>
    %cst_37 = arith.constant 1.000000e+00 : f32
    %71 = vector.broadcast %cst_37 : f32 to vector<2x128xf32>
    %72 = arith.addf %71, %70 : vector<2x128xf32>
    %73 = arith.divf %71, %72 : vector<2x128xf32>
    %74 = math.tanh %68 : vector<2x128xf32>
    %75 = vector.extract_strided_slice %73 {offsets = [0, 32], sizes = [2, 32], strides = [1, 1]} : vector<2x128xf32> to vector<2x32xf32>
    %76 = arith.mulf %75, %11 : vector<2x32xf32>
    %77 = vector.extract_strided_slice %73 {offsets = [0, 0], sizes = [2, 32], strides = [1, 1]} : vector<2x128xf32> to vector<2x32xf32>
    %78 = vector.extract_strided_slice %74 {offsets = [0, 64], sizes = [2, 32], strides = [1, 1]} : vector<2x128xf32> to vector<2x32xf32>
    %79 = arith.mulf %77, %78 : vector<2x32xf32>
    %80 = arith.addf %76, %79 : vector<2x32xf32>
    %81 = vector.extract_strided_slice %73 {offsets = [0, 96], sizes = [2, 32], strides = [1, 1]} : vector<2x128xf32> to vector<2x32xf32>
    %82 = math.tanh %80 : vector<2x32xf32>
    %83 = arith.mulf %81, %82 : vector<2x32xf32>
    %c2 = arith.constant 2 : index
    %c0_38 = arith.constant 0 : index
    %c0_39 = arith.constant 0 : index
    %84 = vector.load %arg0[%c2, %c0_38, %c0_39] : memref<4x2x32xf32, #tpu.memory_space<vmem>>, vector<1x2x32xf32>
    %85 = vector.shape_cast %84 : vector<1x2x32xf32> to vector<2x32xf32>
    %86 = tpu.concatenate %85, %61 in 1 : vector<2x32xf32>, vector<2x32xf32> -> vector<2x64xf32>
    %c2_40 = arith.constant 2 : index
    %c0_41 = arith.constant 0 : index
    %c0_42 = arith.constant 0 : index
    %87 = vector.load %arg2[%c2_40, %c0_41, %c0_42] : memref<7x64x128xf32, #tpu.memory_space<vmem>>, vector<1x64x128xf32>
    %88 = vector.shape_cast %87 : vector<1x64x128xf32> to vector<64x128xf32>
    %cst_43 = arith.constant dense<0.000000e+00> : vector<2x128xf32>
    %89 = tpu.matmul %86, %88, %cst_43 {dimension_numbers = #tpu.dot_dimension_numbers<[1], [0], [0], [1], [0, 0, 1, 1], [], []>} : vector<2x64xf32>, vector<64x128xf32>, vector<2x128xf32> -> vector<2x128xf32>
    %c2_44 = arith.constant 2 : index
    %c0_45 = arith.constant 0 : index
    %90 = vector.load %arg3[%c2_44, %c0_45] : memref<7x128xf32, #tpu.memory_space<vmem>>, vector<1x128xf32>
    %91 = vector.broadcast %90 : vector<1x128xf32> to vector<2x128xf32>
    %92 = arith.addf %89, %91 : vector<2x128xf32>
    %93 = arith.negf %92 : vector<2x128xf32>
    %94 = math.exp %93 : vector<2x128xf32>
    %cst_46 = arith.constant 1.000000e+00 : f32
    %95 = vector.broadcast %cst_46 : f32 to vector<2x128xf32>
    %96 = arith.addf %95, %94 : vector<2x128xf32>
    %97 = arith.divf %95, %96 : vector<2x128xf32>
    %98 = math.tanh %92 : vector<2x128xf32>
    %99 = vector.extract_strided_slice %97 {offsets = [0, 32], sizes = [2, 32], strides = [1, 1]} : vector<2x128xf32> to vector<2x32xf32>
    %100 = arith.mulf %99, %58 : vector<2x32xf32>
    %101 = vector.extract_strided_slice %97 {offsets = [0, 0], sizes = [2, 32], strides = [1, 1]} : vector<2x128xf32> to vector<2x32xf32>
    %102 = vector.extract_strided_slice %98 {offsets = [0, 64], sizes = [2, 32], strides = [1, 1]} : vector<2x128xf32> to vector<2x32xf32>
    %103 = arith.mulf %101, %102 : vector<2x32xf32>
    %104 = arith.addf %100, %103 : vector<2x32xf32>
    %105 = vector.extract_strided_slice %97 {offsets = [0, 96], sizes = [2, 32], strides = [1, 1]} : vector<2x128xf32> to vector<2x32xf32>
    %106 = math.tanh %104 : vector<2x32xf32>
    %107 = arith.mulf %105, %106 : vector<2x32xf32>
    %108 = tpu.concatenate %61, %83 in 1 : vector<2x32xf32>, vector<2x32xf32> -> vector<2x64xf32>
    %c4_47 = arith.constant 4 : index
    %c0_48 = arith.constant 0 : index
    %c0_49 = arith.constant 0 : index
    %109 = vector.load %arg2[%c4_47, %c0_48, %c0_49] : memref<7x64x128xf32, #tpu.memory_space<vmem>>, vector<1x64x128xf32>
    %110 = vector.shape_cast %109 : vector<1x64x128xf32> to vector<64x128xf32>
    %cst_50 = arith.constant dense<0.000000e+00> : vector<2x128xf32>
    %111 = tpu.matmul %108, %110, %cst_50 {dimension_numbers = #tpu.dot_dimension_numbers<[1], [0], [0], [1], [0, 0, 1, 1], [], []>} : vector<2x64xf32>, vector<64x128xf32>, vector<2x128xf32> -> vector<2x128xf32>
    %c4_51 = arith.constant 4 : index
    %c0_52 = arith.constant 0 : index
    %112 = vector.load %arg3[%c4_51, %c0_52] : memref<7x128xf32, #tpu.memory_space<vmem>>, vector<1x128xf32>
    %113 = vector.broadcast %112 : vector<1x128xf32> to vector<2x128xf32>
    %114 = arith.addf %111, %113 : vector<2x128xf32>
    %115 = arith.negf %114 : vector<2x128xf32>
    %116 = math.exp %115 : vector<2x128xf32>
    %cst_53 = arith.constant 1.000000e+00 : f32
    %117 = vector.broadcast %cst_53 : f32 to vector<2x128xf32>
    %118 = arith.addf %117, %116 : vector<2x128xf32>
    %119 = arith.divf %117, %118 : vector<2x128xf32>
    %120 = math.tanh %114 : vector<2x128xf32>
    %121 = vector.extract_strided_slice %119 {offsets = [0, 32], sizes = [2, 32], strides = [1, 1]} : vector<2x128xf32> to vector<2x32xf32>
    %122 = arith.mulf %121, %80 : vector<2x32xf32>
    %123 = vector.extract_strided_slice %119 {offsets = [0, 0], sizes = [2, 32], strides = [1, 1]} : vector<2x128xf32> to vector<2x32xf32>
    %124 = vector.extract_strided_slice %120 {offsets = [0, 64], sizes = [2, 32], strides = [1, 1]} : vector<2x128xf32> to vector<2x32xf32>
    %125 = arith.mulf %123, %124 : vector<2x32xf32>
    %126 = arith.addf %122, %125 : vector<2x32xf32>
    %127 = vector.extract_strided_slice %119 {offsets = [0, 96], sizes = [2, 32], strides = [1, 1]} : vector<2x128xf32> to vector<2x32xf32>
    %128 = math.tanh %126 : vector<2x32xf32>
    %129 = arith.mulf %127, %128 : vector<2x32xf32>
    %130 = tpu.concatenate %83, %8 in 1 : vector<2x32xf32>, vector<2x32xf32> -> vector<2x64xf32>
    %c5 = arith.constant 5 : index
    %c0_54 = arith.constant 0 : index
    %c0_55 = arith.constant 0 : index
    %131 = vector.load %arg2[%c5, %c0_54, %c0_55] : memref<7x64x128xf32, #tpu.memory_space<vmem>>, vector<1x64x128xf32>
    %132 = vector.shape_cast %131 : vector<1x64x128xf32> to vector<64x128xf32>
    %cst_56 = arith.constant dense<0.000000e+00> : vector<2x128xf32>
    %133 = tpu.matmul %130, %132, %cst_56 {dimension_numbers = #tpu.dot_dimension_numbers<[1], [0], [0], [1], [0, 0, 1, 1], [], []>} : vector<2x64xf32>, vector<64x128xf32>, vector<2x128xf32> -> vector<2x128xf32>
    %c5_57 = arith.constant 5 : index
    %c0_58 = arith.constant 0 : index
    %134 = vector.load %arg3[%c5_57, %c0_58] : memref<7x128xf32, #tpu.memory_space<vmem>>, vector<1x128xf32>
    %135 = vector.broadcast %134 : vector<1x128xf32> to vector<2x128xf32>
    %136 = arith.addf %133, %135 : vector<2x128xf32>
    %137 = arith.negf %136 : vector<2x128xf32>
    %138 = math.exp %137 : vector<2x128xf32>
    %cst_59 = arith.constant 1.000000e+00 : f32
    %139 = vector.broadcast %cst_59 : f32 to vector<2x128xf32>
    %140 = arith.addf %139, %138 : vector<2x128xf32>
    %141 = arith.divf %139, %140 : vector<2x128xf32>
    %142 = math.tanh %136 : vector<2x128xf32>
    %143 = vector.extract_strided_slice %141 {offsets = [0, 32], sizes = [2, 32], strides = [1, 1]} : vector<2x128xf32> to vector<2x32xf32>
    %144 = arith.mulf %143, %12 : vector<2x32xf32>
    %145 = vector.extract_strided_slice %141 {offsets = [0, 0], sizes = [2, 32], strides = [1, 1]} : vector<2x128xf32> to vector<2x32xf32>
    %146 = vector.extract_strided_slice %142 {offsets = [0, 64], sizes = [2, 32], strides = [1, 1]} : vector<2x128xf32> to vector<2x32xf32>
    %147 = arith.mulf %145, %146 : vector<2x32xf32>
    %148 = arith.addf %144, %147 : vector<2x32xf32>
    %149 = vector.extract_strided_slice %141 {offsets = [0, 96], sizes = [2, 32], strides = [1, 1]} : vector<2x128xf32> to vector<2x32xf32>
    %150 = math.tanh %148 : vector<2x32xf32>
    %151 = arith.mulf %149, %150 : vector<2x32xf32>
    %c3 = arith.constant 3 : index
    %c0_60 = arith.constant 0 : index
    %c0_61 = arith.constant 0 : index
    %152 = vector.load %arg0[%c3, %c0_60, %c0_61] : memref<4x2x32xf32, #tpu.memory_space<vmem>>, vector<1x2x32xf32>
    %153 = vector.shape_cast %152 : vector<1x2x32xf32> to vector<2x32xf32>
    %154 = tpu.concatenate %153, %107 in 1 : vector<2x32xf32>, vector<2x32xf32> -> vector<2x64xf32>
    %c3_62 = arith.constant 3 : index
    %c0_63 = arith.constant 0 : index
    %c0_64 = arith.constant 0 : index
    %155 = vector.load %arg2[%c3_62, %c0_63, %c0_64] : memref<7x64x128xf32, #tpu.memory_space<vmem>>, vector<1x64x128xf32>
    %156 = vector.shape_cast %155 : vector<1x64x128xf32> to vector<64x128xf32>
    %cst_65 = arith.constant dense<0.000000e+00> : vector<2x128xf32>
    %157 = tpu.matmul %154, %156, %cst_65 {dimension_numbers = #tpu.dot_dimension_numbers<[1], [0], [0], [1], [0, 0, 1, 1], [], []>} : vector<2x64xf32>, vector<64x128xf32>, vector<2x128xf32> -> vector<2x128xf32>
    %c3_66 = arith.constant 3 : index
    %c0_67 = arith.constant 0 : index
    %158 = vector.load %arg3[%c3_66, %c0_67] : memref<7x128xf32, #tpu.memory_space<vmem>>, vector<1x128xf32>
    %159 = vector.broadcast %158 : vector<1x128xf32> to vector<2x128xf32>
    %160 = arith.addf %157, %159 : vector<2x128xf32>
    %161 = arith.negf %160 : vector<2x128xf32>
    %162 = math.exp %161 : vector<2x128xf32>
    %cst_68 = arith.constant 1.000000e+00 : f32
    %163 = vector.broadcast %cst_68 : f32 to vector<2x128xf32>
    %164 = arith.addf %163, %162 : vector<2x128xf32>
    %165 = arith.divf %163, %164 : vector<2x128xf32>
    %166 = math.tanh %160 : vector<2x128xf32>
    %167 = vector.extract_strided_slice %165 {offsets = [0, 32], sizes = [2, 32], strides = [1, 1]} : vector<2x128xf32> to vector<2x32xf32>
    %168 = arith.mulf %167, %104 : vector<2x32xf32>
    %169 = vector.extract_strided_slice %165 {offsets = [0, 0], sizes = [2, 32], strides = [1, 1]} : vector<2x128xf32> to vector<2x32xf32>
    %170 = vector.extract_strided_slice %166 {offsets = [0, 64], sizes = [2, 32], strides = [1, 1]} : vector<2x128xf32> to vector<2x32xf32>
    %171 = arith.mulf %169, %170 : vector<2x32xf32>
    %172 = arith.addf %168, %171 : vector<2x32xf32>
    %173 = vector.extract_strided_slice %165 {offsets = [0, 96], sizes = [2, 32], strides = [1, 1]} : vector<2x128xf32> to vector<2x32xf32>
    %174 = math.tanh %172 : vector<2x32xf32>
    %175 = arith.mulf %173, %174 : vector<2x32xf32>
    %176 = tpu.concatenate %107, %129 in 1 : vector<2x32xf32>, vector<2x32xf32> -> vector<2x64xf32>
    %c4_69 = arith.constant 4 : index
    %c0_70 = arith.constant 0 : index
    %c0_71 = arith.constant 0 : index
    %177 = vector.load %arg2[%c4_69, %c0_70, %c0_71] : memref<7x64x128xf32, #tpu.memory_space<vmem>>, vector<1x64x128xf32>
    %178 = vector.shape_cast %177 : vector<1x64x128xf32> to vector<64x128xf32>
    %cst_72 = arith.constant dense<0.000000e+00> : vector<2x128xf32>
    %179 = tpu.matmul %176, %178, %cst_72 {dimension_numbers = #tpu.dot_dimension_numbers<[1], [0], [0], [1], [0, 0, 1, 1], [], []>} : vector<2x64xf32>, vector<64x128xf32>, vector<2x128xf32> -> vector<2x128xf32>
    %c4_73 = arith.constant 4 : index
    %c0_74 = arith.constant 0 : index
    %180 = vector.load %arg3[%c4_73, %c0_74] : memref<7x128xf32, #tpu.memory_space<vmem>>, vector<1x128xf32>
    %181 = vector.broadcast %180 : vector<1x128xf32> to vector<2x128xf32>
    %182 = arith.addf %179, %181 : vector<2x128xf32>
    %183 = arith.negf %182 : vector<2x128xf32>
    %184 = math.exp %183 : vector<2x128xf32>
    %cst_75 = arith.constant 1.000000e+00 : f32
    %185 = vector.broadcast %cst_75 : f32 to vector<2x128xf32>
    %186 = arith.addf %185, %184 : vector<2x128xf32>
    %187 = arith.divf %185, %186 : vector<2x128xf32>
    %188 = math.tanh %182 : vector<2x128xf32>
    %189 = vector.extract_strided_slice %187 {offsets = [0, 32], sizes = [2, 32], strides = [1, 1]} : vector<2x128xf32> to vector<2x32xf32>
    %190 = arith.mulf %189, %126 : vector<2x32xf32>
    %191 = vector.extract_strided_slice %187 {offsets = [0, 0], sizes = [2, 32], strides = [1, 1]} : vector<2x128xf32> to vector<2x32xf32>
    %192 = vector.extract_strided_slice %188 {offsets = [0, 64], sizes = [2, 32], strides = [1, 1]} : vector<2x128xf32> to vector<2x32xf32>
    %193 = arith.mulf %191, %192 : vector<2x32xf32>
    %194 = arith.addf %190, %193 : vector<2x32xf32>
    %195 = vector.extract_strided_slice %187 {offsets = [0, 96], sizes = [2, 32], strides = [1, 1]} : vector<2x128xf32> to vector<2x32xf32>
    %196 = math.tanh %194 : vector<2x32xf32>
    %197 = arith.mulf %195, %196 : vector<2x32xf32>
    %198 = tpu.concatenate %129, %151 in 1 : vector<2x32xf32>, vector<2x32xf32> -> vector<2x64xf32>
    %c5_76 = arith.constant 5 : index
    %c0_77 = arith.constant 0 : index
    %c0_78 = arith.constant 0 : index
    %199 = vector.load %arg2[%c5_76, %c0_77, %c0_78] : memref<7x64x128xf32, #tpu.memory_space<vmem>>, vector<1x64x128xf32>
    %200 = vector.shape_cast %199 : vector<1x64x128xf32> to vector<64x128xf32>
    %cst_79 = arith.constant dense<0.000000e+00> : vector<2x128xf32>
    %201 = tpu.matmul %198, %200, %cst_79 {dimension_numbers = #tpu.dot_dimension_numbers<[1], [0], [0], [1], [0, 0, 1, 1], [], []>} : vector<2x64xf32>, vector<64x128xf32>, vector<2x128xf32> -> vector<2x128xf32>
    %c5_80 = arith.constant 5 : index
    %c0_81 = arith.constant 0 : index
    %202 = vector.load %arg3[%c5_80, %c0_81] : memref<7x128xf32, #tpu.memory_space<vmem>>, vector<1x128xf32>
    %203 = vector.broadcast %202 : vector<1x128xf32> to vector<2x128xf32>
    %204 = arith.addf %201, %203 : vector<2x128xf32>
    %205 = arith.negf %204 : vector<2x128xf32>
    %206 = math.exp %205 : vector<2x128xf32>
    %cst_82 = arith.constant 1.000000e+00 : f32
    %207 = vector.broadcast %cst_82 : f32 to vector<2x128xf32>
    %208 = arith.addf %207, %206 : vector<2x128xf32>
    %209 = arith.divf %207, %208 : vector<2x128xf32>
    %210 = math.tanh %204 : vector<2x128xf32>
    %211 = vector.extract_strided_slice %209 {offsets = [0, 32], sizes = [2, 32], strides = [1, 1]} : vector<2x128xf32> to vector<2x32xf32>
    %212 = arith.mulf %211, %148 : vector<2x32xf32>
    %213 = vector.extract_strided_slice %209 {offsets = [0, 0], sizes = [2, 32], strides = [1, 1]} : vector<2x128xf32> to vector<2x32xf32>
    %214 = vector.extract_strided_slice %210 {offsets = [0, 64], sizes = [2, 32], strides = [1, 1]} : vector<2x128xf32> to vector<2x32xf32>
    %215 = arith.mulf %213, %214 : vector<2x32xf32>
    %216 = arith.addf %212, %215 : vector<2x32xf32>
    %217 = vector.extract_strided_slice %209 {offsets = [0, 96], sizes = [2, 32], strides = [1, 1]} : vector<2x128xf32> to vector<2x32xf32>
    %218 = math.tanh %216 : vector<2x32xf32>
    %219 = arith.mulf %217, %218 : vector<2x32xf32>
    %220 = tpu.concatenate %151, %9 in 1 : vector<2x32xf32>, vector<2x32xf32> -> vector<2x64xf32>
    %c6 = arith.constant 6 : index
    %c0_83 = arith.constant 0 : index
    %c0_84 = arith.constant 0 : index
    %221 = vector.load %arg2[%c6, %c0_83, %c0_84] : memref<7x64x128xf32, #tpu.memory_space<vmem>>, vector<1x64x128xf32>
    %222 = vector.shape_cast %221 : vector<1x64x128xf32> to vector<64x128xf32>
    %cst_85 = arith.constant dense<0.000000e+00> : vector<2x128xf32>
    %223 = tpu.matmul %220, %222, %cst_85 {dimension_numbers = #tpu.dot_dimension_numbers<[1], [0], [0], [1], [0, 0, 1, 1], [], []>} : vector<2x64xf32>, vector<64x128xf32>, vector<2x128xf32> -> vector<2x128xf32>
    %c6_86 = arith.constant 6 : index
    %c0_87 = arith.constant 0 : index
    %224 = vector.load %arg3[%c6_86, %c0_87] : memref<7x128xf32, #tpu.memory_space<vmem>>, vector<1x128xf32>
    %225 = vector.broadcast %224 : vector<1x128xf32> to vector<2x128xf32>
    %226 = arith.addf %223, %225 : vector<2x128xf32>
    %227 = arith.negf %226 : vector<2x128xf32>
    %228 = math.exp %227 : vector<2x128xf32>
    %cst_88 = arith.constant 1.000000e+00 : f32
    %229 = vector.broadcast %cst_88 : f32 to vector<2x128xf32>
    %230 = arith.addf %229, %228 : vector<2x128xf32>
    %231 = arith.divf %229, %230 : vector<2x128xf32>
    %232 = math.tanh %226 : vector<2x128xf32>
    %233 = vector.extract_strided_slice %231 {offsets = [0, 32], sizes = [2, 32], strides = [1, 1]} : vector<2x128xf32> to vector<2x32xf32>
    %234 = arith.mulf %233, %13 : vector<2x32xf32>
    %235 = vector.extract_strided_slice %231 {offsets = [0, 0], sizes = [2, 32], strides = [1, 1]} : vector<2x128xf32> to vector<2x32xf32>
    %236 = vector.extract_strided_slice %232 {offsets = [0, 64], sizes = [2, 32], strides = [1, 1]} : vector<2x128xf32> to vector<2x32xf32>
    %237 = arith.mulf %235, %236 : vector<2x32xf32>
    %238 = arith.addf %234, %237 : vector<2x32xf32>
    %239 = vector.extract_strided_slice %231 {offsets = [0, 96], sizes = [2, 32], strides = [1, 1]} : vector<2x128xf32> to vector<2x32xf32>
    %240 = math.tanh %238 : vector<2x32xf32>
    %241 = arith.mulf %239, %240 : vector<2x32xf32>
    %242 = tpu.concatenate %175, %197 in 1 : vector<2x32xf32>, vector<2x32xf32> -> vector<2x64xf32>
    %c4_89 = arith.constant 4 : index
    %c0_90 = arith.constant 0 : index
    %c0_91 = arith.constant 0 : index
    %243 = vector.load %arg2[%c4_89, %c0_90, %c0_91] : memref<7x64x128xf32, #tpu.memory_space<vmem>>, vector<1x64x128xf32>
    %244 = vector.shape_cast %243 : vector<1x64x128xf32> to vector<64x128xf32>
    %cst_92 = arith.constant dense<0.000000e+00> : vector<2x128xf32>
    %245 = tpu.matmul %242, %244, %cst_92 {dimension_numbers = #tpu.dot_dimension_numbers<[1], [0], [0], [1], [0, 0, 1, 1], [], []>} : vector<2x64xf32>, vector<64x128xf32>, vector<2x128xf32> -> vector<2x128xf32>
    %c4_93 = arith.constant 4 : index
    %c0_94 = arith.constant 0 : index
    %246 = vector.load %arg3[%c4_93, %c0_94] : memref<7x128xf32, #tpu.memory_space<vmem>>, vector<1x128xf32>
    %247 = vector.broadcast %246 : vector<1x128xf32> to vector<2x128xf32>
    %248 = arith.addf %245, %247 : vector<2x128xf32>
    %249 = arith.negf %248 : vector<2x128xf32>
    %250 = math.exp %249 : vector<2x128xf32>
    %cst_95 = arith.constant 1.000000e+00 : f32
    %251 = vector.broadcast %cst_95 : f32 to vector<2x128xf32>
    %252 = arith.addf %251, %250 : vector<2x128xf32>
    %253 = arith.divf %251, %252 : vector<2x128xf32>
    %254 = math.tanh %248 : vector<2x128xf32>
    %255 = vector.extract_strided_slice %253 {offsets = [0, 32], sizes = [2, 32], strides = [1, 1]} : vector<2x128xf32> to vector<2x32xf32>
    %256 = arith.mulf %255, %194 : vector<2x32xf32>
    %257 = vector.extract_strided_slice %253 {offsets = [0, 0], sizes = [2, 32], strides = [1, 1]} : vector<2x128xf32> to vector<2x32xf32>
    %258 = vector.extract_strided_slice %254 {offsets = [0, 64], sizes = [2, 32], strides = [1, 1]} : vector<2x128xf32> to vector<2x32xf32>
    %259 = arith.mulf %257, %258 : vector<2x32xf32>
    %260 = arith.addf %256, %259 : vector<2x32xf32>
    %261 = vector.extract_strided_slice %253 {offsets = [0, 96], sizes = [2, 32], strides = [1, 1]} : vector<2x128xf32> to vector<2x32xf32>
    %262 = math.tanh %260 : vector<2x32xf32>
    %263 = arith.mulf %261, %262 : vector<2x32xf32>
    %264 = tpu.concatenate %197, %219 in 1 : vector<2x32xf32>, vector<2x32xf32> -> vector<2x64xf32>
    %c5_96 = arith.constant 5 : index
    %c0_97 = arith.constant 0 : index
    %c0_98 = arith.constant 0 : index
    %265 = vector.load %arg2[%c5_96, %c0_97, %c0_98] : memref<7x64x128xf32, #tpu.memory_space<vmem>>, vector<1x64x128xf32>
    %266 = vector.shape_cast %265 : vector<1x64x128xf32> to vector<64x128xf32>
    %cst_99 = arith.constant dense<0.000000e+00> : vector<2x128xf32>
    %267 = tpu.matmul %264, %266, %cst_99 {dimension_numbers = #tpu.dot_dimension_numbers<[1], [0], [0], [1], [0, 0, 1, 1], [], []>} : vector<2x64xf32>, vector<64x128xf32>, vector<2x128xf32> -> vector<2x128xf32>
    %c5_100 = arith.constant 5 : index
    %c0_101 = arith.constant 0 : index
    %268 = vector.load %arg3[%c5_100, %c0_101] : memref<7x128xf32, #tpu.memory_space<vmem>>, vector<1x128xf32>
    %269 = vector.broadcast %268 : vector<1x128xf32> to vector<2x128xf32>
    %270 = arith.addf %267, %269 : vector<2x128xf32>
    %271 = arith.negf %270 : vector<2x128xf32>
    %272 = math.exp %271 : vector<2x128xf32>
    %cst_102 = arith.constant 1.000000e+00 : f32
    %273 = vector.broadcast %cst_102 : f32 to vector<2x128xf32>
    %274 = arith.addf %273, %272 : vector<2x128xf32>
    %275 = arith.divf %273, %274 : vector<2x128xf32>
    %276 = math.tanh %270 : vector<2x128xf32>
    %277 = vector.extract_strided_slice %275 {offsets = [0, 32], sizes = [2, 32], strides = [1, 1]} : vector<2x128xf32> to vector<2x32xf32>
    %278 = arith.mulf %277, %216 : vector<2x32xf32>
    %279 = vector.extract_strided_slice %275 {offsets = [0, 0], sizes = [2, 32], strides = [1, 1]} : vector<2x128xf32> to vector<2x32xf32>
    %280 = vector.extract_strided_slice %276 {offsets = [0, 64], sizes = [2, 32], strides = [1, 1]} : vector<2x128xf32> to vector<2x32xf32>
    %281 = arith.mulf %279, %280 : vector<2x32xf32>
    %282 = arith.addf %278, %281 : vector<2x32xf32>
    %283 = vector.extract_strided_slice %275 {offsets = [0, 96], sizes = [2, 32], strides = [1, 1]} : vector<2x128xf32> to vector<2x32xf32>
    %284 = math.tanh %282 : vector<2x32xf32>
    %285 = arith.mulf %283, %284 : vector<2x32xf32>
    %286 = tpu.concatenate %219, %241 in 1 : vector<2x32xf32>, vector<2x32xf32> -> vector<2x64xf32>
    %c6_103 = arith.constant 6 : index
    %c0_104 = arith.constant 0 : index
    %c0_105 = arith.constant 0 : index
    %287 = vector.load %arg2[%c6_103, %c0_104, %c0_105] : memref<7x64x128xf32, #tpu.memory_space<vmem>>, vector<1x64x128xf32>
    %288 = vector.shape_cast %287 : vector<1x64x128xf32> to vector<64x128xf32>
    %cst_106 = arith.constant dense<0.000000e+00> : vector<2x128xf32>
    %289 = tpu.matmul %286, %288, %cst_106 {dimension_numbers = #tpu.dot_dimension_numbers<[1], [0], [0], [1], [0, 0, 1, 1], [], []>} : vector<2x64xf32>, vector<64x128xf32>, vector<2x128xf32> -> vector<2x128xf32>
    %c6_107 = arith.constant 6 : index
    %c0_108 = arith.constant 0 : index
    %290 = vector.load %arg3[%c6_107, %c0_108] : memref<7x128xf32, #tpu.memory_space<vmem>>, vector<1x128xf32>
    %291 = vector.broadcast %290 : vector<1x128xf32> to vector<2x128xf32>
    %292 = arith.addf %289, %291 : vector<2x128xf32>
    %293 = arith.negf %292 : vector<2x128xf32>
    %294 = math.exp %293 : vector<2x128xf32>
    %cst_109 = arith.constant 1.000000e+00 : f32
    %295 = vector.broadcast %cst_109 : f32 to vector<2x128xf32>
    %296 = arith.addf %295, %294 : vector<2x128xf32>
    %297 = arith.divf %295, %296 : vector<2x128xf32>
    %298 = math.tanh %292 : vector<2x128xf32>
    %299 = vector.extract_strided_slice %297 {offsets = [0, 32], sizes = [2, 32], strides = [1, 1]} : vector<2x128xf32> to vector<2x32xf32>
    %300 = arith.mulf %299, %238 : vector<2x32xf32>
    %301 = vector.extract_strided_slice %297 {offsets = [0, 0], sizes = [2, 32], strides = [1, 1]} : vector<2x128xf32> to vector<2x32xf32>
    %302 = vector.extract_strided_slice %298 {offsets = [0, 64], sizes = [2, 32], strides = [1, 1]} : vector<2x128xf32> to vector<2x32xf32>
    %303 = arith.mulf %301, %302 : vector<2x32xf32>
    %304 = arith.addf %300, %303 : vector<2x32xf32>
    %305 = vector.extract_strided_slice %297 {offsets = [0, 96], sizes = [2, 32], strides = [1, 1]} : vector<2x128xf32> to vector<2x32xf32>
    %306 = math.tanh %304 : vector<2x32xf32>
    %307 = arith.mulf %305, %306 : vector<2x32xf32>
    %308 = tpu.concatenate %263, %285 in 1 : vector<2x32xf32>, vector<2x32xf32> -> vector<2x64xf32>
    %c5_110 = arith.constant 5 : index
    %c0_111 = arith.constant 0 : index
    %c0_112 = arith.constant 0 : index
    %309 = vector.load %arg2[%c5_110, %c0_111, %c0_112] : memref<7x64x128xf32, #tpu.memory_space<vmem>>, vector<1x64x128xf32>
    %310 = vector.shape_cast %309 : vector<1x64x128xf32> to vector<64x128xf32>
    %cst_113 = arith.constant dense<0.000000e+00> : vector<2x128xf32>
    %311 = tpu.matmul %308, %310, %cst_113 {dimension_numbers = #tpu.dot_dimension_numbers<[1], [0], [0], [1], [0, 0, 1, 1], [], []>} : vector<2x64xf32>, vector<64x128xf32>, vector<2x128xf32> -> vector<2x128xf32>
    %c5_114 = arith.constant 5 : index
    %c0_115 = arith.constant 0 : index
    %312 = vector.load %arg3[%c5_114, %c0_115] : memref<7x128xf32, #tpu.memory_space<vmem>>, vector<1x128xf32>
    %313 = vector.broadcast %312 : vector<1x128xf32> to vector<2x128xf32>
    %314 = arith.addf %311, %313 : vector<2x128xf32>
    %315 = arith.negf %314 : vector<2x128xf32>
    %316 = math.exp %315 : vector<2x128xf32>
    %cst_116 = arith.constant 1.000000e+00 : f32
    %317 = vector.broadcast %cst_116 : f32 to vector<2x128xf32>
    %318 = arith.addf %317, %316 : vector<2x128xf32>
    %319 = arith.divf %317, %318 : vector<2x128xf32>
    %320 = math.tanh %314 : vector<2x128xf32>
    %321 = vector.extract_strided_slice %319 {offsets = [0, 32], sizes = [2, 32], strides = [1, 1]} : vector<2x128xf32> to vector<2x32xf32>
    %322 = arith.mulf %321, %282 : vector<2x32xf32>
    %323 = vector.extract_strided_slice %319 {offsets = [0, 0], sizes = [2, 32], strides = [1, 1]} : vector<2x128xf32> to vector<2x32xf32>
    %324 = vector.extract_strided_slice %320 {offsets = [0, 64], sizes = [2, 32], strides = [1, 1]} : vector<2x128xf32> to vector<2x32xf32>
    %325 = arith.mulf %323, %324 : vector<2x32xf32>
    %326 = arith.addf %322, %325 : vector<2x32xf32>
    %327 = vector.extract_strided_slice %319 {offsets = [0, 96], sizes = [2, 32], strides = [1, 1]} : vector<2x128xf32> to vector<2x32xf32>
    %328 = math.tanh %326 : vector<2x32xf32>
    %329 = arith.mulf %327, %328 : vector<2x32xf32>
    %330 = tpu.concatenate %285, %307 in 1 : vector<2x32xf32>, vector<2x32xf32> -> vector<2x64xf32>
    %c6_117 = arith.constant 6 : index
    %c0_118 = arith.constant 0 : index
    %c0_119 = arith.constant 0 : index
    %331 = vector.load %arg2[%c6_117, %c0_118, %c0_119] : memref<7x64x128xf32, #tpu.memory_space<vmem>>, vector<1x64x128xf32>
    %332 = vector.shape_cast %331 : vector<1x64x128xf32> to vector<64x128xf32>
    %cst_120 = arith.constant dense<0.000000e+00> : vector<2x128xf32>
    %333 = tpu.matmul %330, %332, %cst_120 {dimension_numbers = #tpu.dot_dimension_numbers<[1], [0], [0], [1], [0, 0, 1, 1], [], []>} : vector<2x64xf32>, vector<64x128xf32>, vector<2x128xf32> -> vector<2x128xf32>
    %c6_121 = arith.constant 6 : index
    %c0_122 = arith.constant 0 : index
    %334 = vector.load %arg3[%c6_121, %c0_122] : memref<7x128xf32, #tpu.memory_space<vmem>>, vector<1x128xf32>
    %335 = vector.broadcast %334 : vector<1x128xf32> to vector<2x128xf32>
    %336 = arith.addf %333, %335 : vector<2x128xf32>
    %337 = arith.negf %336 : vector<2x128xf32>
    %338 = math.exp %337 : vector<2x128xf32>
    %cst_123 = arith.constant 1.000000e+00 : f32
    %339 = vector.broadcast %cst_123 : f32 to vector<2x128xf32>
    %340 = arith.addf %339, %338 : vector<2x128xf32>
    %341 = arith.divf %339, %340 : vector<2x128xf32>
    %342 = math.tanh %336 : vector<2x128xf32>
    %343 = vector.extract_strided_slice %341 {offsets = [0, 32], sizes = [2, 32], strides = [1, 1]} : vector<2x128xf32> to vector<2x32xf32>
    %344 = arith.mulf %343, %304 : vector<2x32xf32>
    %345 = vector.extract_strided_slice %341 {offsets = [0, 0], sizes = [2, 32], strides = [1, 1]} : vector<2x128xf32> to vector<2x32xf32>
    %346 = vector.extract_strided_slice %342 {offsets = [0, 64], sizes = [2, 32], strides = [1, 1]} : vector<2x128xf32> to vector<2x32xf32>
    %347 = arith.mulf %345, %346 : vector<2x32xf32>
    %348 = arith.addf %344, %347 : vector<2x32xf32>
    %349 = vector.extract_strided_slice %341 {offsets = [0, 96], sizes = [2, 32], strides = [1, 1]} : vector<2x128xf32> to vector<2x32xf32>
    %350 = math.tanh %348 : vector<2x32xf32>
    %351 = arith.mulf %349, %350 : vector<2x32xf32>
    %352 = tpu.concatenate %329, %351 in 1 : vector<2x32xf32>, vector<2x32xf32> -> vector<2x64xf32>
    %c6_124 = arith.constant 6 : index
    %c0_125 = arith.constant 0 : index
    %c0_126 = arith.constant 0 : index
    %353 = vector.load %arg2[%c6_124, %c0_125, %c0_126] : memref<7x64x128xf32, #tpu.memory_space<vmem>>, vector<1x64x128xf32>
    %354 = vector.shape_cast %353 : vector<1x64x128xf32> to vector<64x128xf32>
    %cst_127 = arith.constant dense<0.000000e+00> : vector<2x128xf32>
    %355 = tpu.matmul %352, %354, %cst_127 {dimension_numbers = #tpu.dot_dimension_numbers<[1], [0], [0], [1], [0, 0, 1, 1], [], []>} : vector<2x64xf32>, vector<64x128xf32>, vector<2x128xf32> -> vector<2x128xf32>
    %c6_128 = arith.constant 6 : index
    %c0_129 = arith.constant 0 : index
    %356 = vector.load %arg3[%c6_128, %c0_129] : memref<7x128xf32, #tpu.memory_space<vmem>>, vector<1x128xf32>
    %357 = vector.broadcast %356 : vector<1x128xf32> to vector<2x128xf32>
    %358 = arith.addf %355, %357 : vector<2x128xf32>
    %359 = arith.negf %358 : vector<2x128xf32>
    %360 = math.exp %359 : vector<2x128xf32>
    %cst_130 = arith.constant 1.000000e+00 : f32
    %361 = vector.broadcast %cst_130 : f32 to vector<2x128xf32>
    %362 = arith.addf %361, %360 : vector<2x128xf32>
    %363 = arith.divf %361, %362 : vector<2x128xf32>
    %364 = math.tanh %358 : vector<2x128xf32>
    %365 = vector.extract_strided_slice %363 {offsets = [0, 32], sizes = [2, 32], strides = [1, 1]} : vector<2x128xf32> to vector<2x32xf32>
    %366 = arith.mulf %365, %348 : vector<2x32xf32>
    %367 = vector.extract_strided_slice %363 {offsets = [0, 0], sizes = [2, 32], strides = [1, 1]} : vector<2x128xf32> to vector<2x32xf32>
    %368 = vector.extract_strided_slice %364 {offsets = [0, 64], sizes = [2, 32], strides = [1, 1]} : vector<2x128xf32> to vector<2x32xf32>
    %369 = arith.mulf %367, %368 : vector<2x32xf32>
    %370 = arith.addf %366, %369 : vector<2x32xf32>
    %371 = vector.extract_strided_slice %363 {offsets = [0, 96], sizes = [2, 32], strides = [1, 1]} : vector<2x128xf32> to vector<2x32xf32>
    %372 = math.tanh %370 : vector<2x32xf32>
    %373 = arith.mulf %371, %372 : vector<2x32xf32>
    %c1_131 = arith.constant 1 : index
    %c0_132 = arith.constant 0 : index
    %374 = vector.load %arg6[%c1_131, %c0_132] : memref<8x128xf32, #tpu.memory_space<vmem>>, vector<1x32xf32>
    %c2_133 = arith.constant 2 : index
    %c0_134 = arith.constant 0 : index
    %375 = vector.load %arg6[%c2_133, %c0_134] : memref<8x128xf32, #tpu.memory_space<vmem>>, vector<1x32xf32>
    %c3_135 = arith.constant 3 : index
    %c0_136 = arith.constant 0 : index
    %376 = vector.load %arg6[%c3_135, %c0_136] : memref<8x128xf32, #tpu.memory_space<vmem>>, vector<1x32xf32>
    %c4_137 = arith.constant 4 : index
    %c0_138 = arith.constant 0 : index
    %377 = vector.load %arg6[%c4_137, %c0_138] : memref<8x128xf32, #tpu.memory_space<vmem>>, vector<1x32xf32>
    %c5_139 = arith.constant 5 : index
    %c0_140 = arith.constant 0 : index
    %378 = vector.load %arg6[%c5_139, %c0_140] : memref<8x128xf32, #tpu.memory_space<vmem>>, vector<1x32xf32>
    %c6_141 = arith.constant 6 : index
    %c0_142 = arith.constant 0 : index
    %379 = vector.load %arg6[%c6_141, %c0_142] : memref<8x128xf32, #tpu.memory_space<vmem>>, vector<1x32xf32>
    %380 = tpu.concatenate %373, %5 in 1 : vector<2x32xf32>, vector<2x32xf32> -> vector<2x64xf32>
    %c0_143 = arith.constant 0 : index
    %c0_144 = arith.constant 0 : index
    %c0_145 = arith.constant 0 : index
    %381 = vector.load %arg4[%c0_143, %c0_144, %c0_145] : memref<3x64x128xf32, #tpu.memory_space<vmem>>, vector<1x64x128xf32>
    %382 = vector.shape_cast %381 : vector<1x64x128xf32> to vector<64x128xf32>
    %cst_146 = arith.constant dense<0.000000e+00> : vector<2x128xf32>
    %383 = tpu.matmul %380, %382, %cst_146 {dimension_numbers = #tpu.dot_dimension_numbers<[1], [0], [0], [1], [0, 0, 1, 1], [], []>} : vector<2x64xf32>, vector<64x128xf32>, vector<2x128xf32> -> vector<2x128xf32>
    %384 = vector.extract_strided_slice %383 {offsets = [0, 0], sizes = [2, 32], strides = [1, 1]} : vector<2x128xf32> to vector<2x32xf32>
    %385 = vector.broadcast %374 : vector<1x32xf32> to vector<2x32xf32>
    %386 = arith.addf %384, %385 : vector<2x32xf32>
    %cst_147 = arith.constant dense<0.000000e+00> : vector<2xf32>
    %387 = vector.multi_reduction <add>, %386, %cst_147 [1] : vector<2x32xf32> to vector<2xf32>
    %388 = vector.shape_cast %387 : vector<2xf32> to vector<2x1xf32>
    %cst_148 = arith.constant 3.200000e+01 : f32
    %389 = vector.broadcast %cst_148 : f32 to vector<2x1xf32>
    %390 = arith.divf %388, %389 : vector<2x1xf32>
    %391 = vector.broadcast %390 : vector<2x1xf32> to vector<2x32xf32>
    %392 = arith.subf %386, %391 : vector<2x32xf32>
    %393 = arith.mulf %392, %392 : vector<2x32xf32>
    %cst_149 = arith.constant dense<0.000000e+00> : vector<2xf32>
    %394 = vector.multi_reduction <add>, %393, %cst_149 [1] : vector<2x32xf32> to vector<2xf32>
    %395 = vector.shape_cast %394 : vector<2xf32> to vector<2x1xf32>
    %cst_150 = arith.constant 3.200000e+01 : f32
    %396 = vector.broadcast %cst_150 : f32 to vector<2x1xf32>
    %397 = arith.divf %395, %396 : vector<2x1xf32>
    %398 = vector.broadcast %390 : vector<2x1xf32> to vector<2x32xf32>
    %399 = arith.subf %386, %398 : vector<2x32xf32>
    %cst_151 = arith.constant 9.99999974E-6 : f32
    %400 = vector.broadcast %cst_151 : f32 to vector<2x1xf32>
    %401 = arith.addf %397, %400 : vector<2x1xf32>
    %402 = math.rsqrt %401 : vector<2x1xf32>
    %403 = vector.broadcast %402 : vector<2x1xf32> to vector<2x32xf32>
    %404 = arith.mulf %399, %403 : vector<2x32xf32>
    %405 = vector.broadcast %375 : vector<1x32xf32> to vector<2x32xf32>
    %406 = arith.mulf %404, %405 : vector<2x32xf32>
    %407 = vector.broadcast %376 : vector<1x32xf32> to vector<2x32xf32>
    %408 = arith.addf %406, %407 : vector<2x32xf32>
    %cst_152 = arith.constant 0.000000e+00 : f32
    %409 = vector.broadcast %cst_152 : f32 to vector<2x32xf32>
    %410 = arith.maximumf %408, %409 : vector<2x32xf32>
    %c1_153 = arith.constant 1 : index
    %c0_154 = arith.constant 0 : index
    %c0_155 = arith.constant 0 : index
    %411 = vector.load %arg4[%c1_153, %c0_154, %c0_155] : memref<3x64x128xf32, #tpu.memory_space<vmem>>, vector<1x64x128xf32>
    %412 = vector.shape_cast %411 : vector<1x64x128xf32> to vector<64x128xf32>
    %413 = vector.extract_strided_slice %412 {offsets = [0, 0], sizes = [32, 128], strides = [1, 1]} : vector<64x128xf32> to vector<32x128xf32>
    %cst_156 = arith.constant dense<0.000000e+00> : vector<2x128xf32>
    %414 = tpu.matmul %410, %413, %cst_156 {dimension_numbers = #tpu.dot_dimension_numbers<[1], [0], [0], [1], [0, 0, 1, 1], [], []>} : vector<2x32xf32>, vector<32x128xf32>, vector<2x128xf32> -> vector<2x128xf32>
    %415 = vector.extract_strided_slice %414 {offsets = [0, 0], sizes = [2, 32], strides = [1, 1]} : vector<2x128xf32> to vector<2x32xf32>
    %416 = vector.broadcast %377 : vector<1x32xf32> to vector<2x32xf32>
    %417 = arith.addf %415, %416 : vector<2x32xf32>
    %cst_157 = arith.constant dense<0.000000e+00> : vector<2xf32>
    %418 = vector.multi_reduction <add>, %417, %cst_157 [1] : vector<2x32xf32> to vector<2xf32>
    %419 = vector.shape_cast %418 : vector<2xf32> to vector<2x1xf32>
    %cst_158 = arith.constant 3.200000e+01 : f32
    %420 = vector.broadcast %cst_158 : f32 to vector<2x1xf32>
    %421 = arith.divf %419, %420 : vector<2x1xf32>
    %422 = vector.broadcast %421 : vector<2x1xf32> to vector<2x32xf32>
    %423 = arith.subf %417, %422 : vector<2x32xf32>
    %424 = arith.mulf %423, %423 : vector<2x32xf32>
    %cst_159 = arith.constant dense<0.000000e+00> : vector<2xf32>
    %425 = vector.multi_reduction <add>, %424, %cst_159 [1] : vector<2x32xf32> to vector<2xf32>
    %426 = vector.shape_cast %425 : vector<2xf32> to vector<2x1xf32>
    %cst_160 = arith.constant 3.200000e+01 : f32
    %427 = vector.broadcast %cst_160 : f32 to vector<2x1xf32>
    %428 = arith.divf %426, %427 : vector<2x1xf32>
    %429 = vector.broadcast %421 : vector<2x1xf32> to vector<2x32xf32>
    %430 = arith.subf %417, %429 : vector<2x32xf32>
    %cst_161 = arith.constant 9.99999974E-6 : f32
    %431 = vector.broadcast %cst_161 : f32 to vector<2x1xf32>
    %432 = arith.addf %428, %431 : vector<2x1xf32>
    %433 = math.rsqrt %432 : vector<2x1xf32>
    %434 = vector.broadcast %433 : vector<2x1xf32> to vector<2x32xf32>
    %435 = arith.mulf %430, %434 : vector<2x32xf32>
    %436 = vector.broadcast %378 : vector<1x32xf32> to vector<2x32xf32>
    %437 = arith.mulf %435, %436 : vector<2x32xf32>
    %438 = vector.broadcast %379 : vector<1x32xf32> to vector<2x32xf32>
    %439 = arith.addf %437, %438 : vector<2x32xf32>
    %cst_162 = arith.constant 0.000000e+00 : f32
    %440 = vector.broadcast %cst_162 : f32 to vector<2x32xf32>
    %441 = arith.maximumf %439, %440 : vector<2x32xf32>
    %c2_163 = arith.constant 2 : index
    %c0_164 = arith.constant 0 : index
    %c0_165 = arith.constant 0 : index
    %442 = vector.load %arg4[%c2_163, %c0_164, %c0_165] : memref<3x64x128xf32, #tpu.memory_space<vmem>>, vector<1x64x128xf32>
    %443 = vector.shape_cast %442 : vector<1x64x128xf32> to vector<64x128xf32>
    %444 = vector.extract_strided_slice %443 {offsets = [0, 0], sizes = [32, 128], strides = [1, 1]} : vector<64x128xf32> to vector<32x128xf32>
    %cst_166 = arith.constant dense<0.000000e+00> : vector<2x128xf32>
    %445 = tpu.matmul %441, %444, %cst_166 {dimension_numbers = #tpu.dot_dimension_numbers<[1], [0], [0], [1], [0, 0, 1, 1], [], []>} : vector<2x32xf32>, vector<32x128xf32>, vector<2x128xf32> -> vector<2x128xf32>
    %c7 = arith.constant 7 : index
    %c0_167 = arith.constant 0 : index
    %446 = vector.load %arg6[%c7, %c0_167] : memref<8x128xf32, #tpu.memory_space<vmem>>, vector<1x128xf32>
    %447 = vector.broadcast %446 : vector<1x128xf32> to vector<2x128xf32>
    %448 = arith.addf %445, %447 : vector<2x128xf32>
    %c0_168 = arith.constant 0 : index
    %c0_169 = arith.constant 0 : index
    %449 = vector.load %arg8[%c0_168, %c0_169] : memref<2x128xf32, #tpu.memory_space<vmem>>, vector<2x128xf32>
    tpu.vector_store %arg8[%c0_168, %c0_169], %448 {strides = array<i32>} : memref<2x128xf32, #tpu.memory_space<vmem>>, vector<2x128xf32>,
    %450 = tpu.concatenate %175, %263, %329, %373, %172, %260, %326, %370 in 1 : vector<2x32xf32>, vector<2x32xf32>, vector<2x32xf32>, vector<2x32xf32>, vector<2x32xf32>, vector<2x32xf32>, vector<2x32xf32>, vector<2x32xf32> -> vector<2x256xf32>
    %c0_170 = arith.constant 0 : index
    %c0_171 = arith.constant 0 : index
    %451 = vector.load %arg7[%c0_170, %c0_171] : memref<2x256xf32, #tpu.memory_space<vmem>>, vector<2x256xf32>
    tpu.vector_store %arg7[%c0_170, %c0_171], %450 {strides = array<i32>} : memref<2x256xf32, #tpu.memory_space<vmem>>, vector<2x256xf32>,
    return
  }
}

</mosaic_0001>

<bundles_post_ra>
// kernel: tpu_custom_call.1
= control target key start
LH: loop header
LB: loop body
LE: loop exit
PB: predicated region body
PF: predicated region fallthrough
CT: control target
= control target key end

     0   :  { %14 = vsyncpa [#allocation3], 0  ;;  %s3981_s0 = inlined_call_operand.hbm [shape: f32[4,2,32], index: 0, kind: input, shape index: {}]   ;;  %s3982_s1 = inlined_call_operand.vmem [shape: f32[2,3], index: 1, kind: input, shape index: {}]   ;;  %s3983_s2 = inlined_call_operand.hbm [shape: f32[7,64,128], index: 2, kind: input, shape index: {}]   ;;  %s3984_s3 = inlined_call_operand.vmem [shape: f32[7,128], index: 3, kind: input, shape index: {}]   ;;  %s3985_s4 = inlined_call_operand.hbm [shape: f32[3,64,128], index: 4, kind: input, shape index: {}]   ;;  %s3986_s5 = inlined_call_operand.hbm [shape: f32[3,32], index: 5, kind: input, shape index: {}]   ;;  %s3987_s6 = inlined_call_operand.vmem [shape: f32[8,128], index: 6, kind: input, shape index: {}]   ;;  %s3988_s7 = inlined_call_operand.hbm [shape: f32[2,256], index: 7, kind: output, shape index: {0}]   ;;  %s3989_s8 = inlined_call_operand.hbm [shape: f32[2,128], index: 8, kind: output, shape index: {1}]  }
   0x1   :  { %15 = vsyncpa [#allocation6], 0 }
   0x2   :  { %16 = vsyncpa [#allocation9], 0 }
   0x3   :  { %17 = vsyncpa [#allocation4], 0 }
   0x4   :  { %18 = vsyncpa [#allocation12], 0  ;;  %s3388_s27 = smov [#allocation5]   ;;  %s3246_s9 = scalar_lea.hbm %s3983_s2, 7168 }
   0x5   :  { %s38_s28 = sshll.u32 %s3388_s27, 4  ;;  %p3247_p0 = scmp.ne.s32.totalorder %s3983_s2, %s3246_s9  ;;  %s39_s28 = int_to_ptr.vmem [resolvable:$true] %s38_s28 }
   0x6   :  { %p3250_p1 = scmp.lt.u32.totalorder %s3246_s9, %s3983_s2 }
   0x8   :  { %p3252_p2 = pnand %p3250_p1, %p3247_p0 }
   0xa   :  { %3255 = shalt.err (!%p3252_p2)
}
   0xb   :  { %s3256_s14 = scalar_lea.vmem %s39_s28, 7168  ;;  %p3261_p4 = scmp.lt.s32.totalorder %s39_s28, %s39_s28 }
   0xc   :  { %p3257_p3 = scmp.ne.s32.totalorder %s39_s28, %s3256_s14  ;;  %p3262_p5 = scmp.lt.s32.totalorder %s3256_s14, %s3256_s14 }
   0xe   :  { %p3263_p6 = por %p3262_p5, %p3261_p4 }
  0x10   :  { %p3264_p7 = pnand %p3263_p6, %p3257_p3 }
  0x12   :  { %3267 = shalt.err (!%p3264_p7)
}
  0x13   :  { %s3389_s15 = smov 128   ;;  %s3390_s16 = smov 8  }
  0x14   :  { %44 = dma.hbm_to_vmem [thread:$0]  %s3983_s2, 7168, %s39_s28, [#allocation6], %s3389_s15, %s3389_s15, %s3390_s16  }
  0x15   :  { %s3391_s19 = smov [#allocation2]   ;;  %s3268_s23 = scalar_lea.hbm %s3981_s0, 128 }
  0x16   :  { %s24_s20 = sshll.u32 %s3391_s19, 4  ;;  %p3269_p8 = scmp.ne.s32.totalorder %s3981_s0, %s3268_s23  ;;  %s25_s20 = int_to_ptr.vmem [resolvable:$true] %s24_s20 }
  0x17   :  { %p3272_p9 = scmp.lt.u32.totalorder %s3268_s23, %s3981_s0 }
  0x19   :  { %p3274_p10 = pnand %p3272_p9, %p3269_p8 }
  0x1b   :  { %3277 = shalt.err (!%p3274_p10)
}
  0x1c   :  { %s3278_s29 = scalar_lea.vmem %s25_s20, 128  ;;  %p3283_p12 = scmp.lt.s32.totalorder %s25_s20, %s25_s20 }
  0x1d   :  { %p3279_p11 = scmp.ne.s32.totalorder %s25_s20, %s3278_s29  ;;  %p3284_p13 = scmp.lt.s32.totalorder %s3278_s29, %s3278_s29 }
  0x1f   :  { %p3285_p0 = por %p3284_p13, %p3283_p12 }
  0x21   :  { %p3286_p1 = pnand %p3285_p0, %p3279_p11 }
  0x23   :  { %3289 = shalt.err (!%p3286_p1)
}
  0x24   :  { %s3392_s2 = smov 32   ;;  %s3393_s28 = smov 2  }
  0x25   :  { %30 = dma.hbm_to_vmem [thread:$0]  %s3981_s0, 128, %s25_s20, [#allocation3], %s3392_s2, %s3392_s2, %s3393_s28  }
  0x26   :  { %s3394_s10 = smov [#allocation7]   ;;  %s3395_s12 = smov [#allocation8]  }
  0x27   :  { %s52_s11 = sshll.u32 %s3394_s10, 4  ;;  %s65_s13 = sshll.u32 %s3395_s12, 4  ;;  %s53_s11 = int_to_ptr.vmem [resolvable:$true] %s52_s11  ;;  %s66_s13 = int_to_ptr.vmem [resolvable:$true] %s65_s13 }
  0x28   :  { %s3290_s18 = scalar_lea.hbm %s3985_s4, 3072 }
  0x29   :  { %p3291_p2 = scmp.ne.s32.totalorder %s3985_s4, %s3290_s18  ;;  %p3294_p3 = scmp.lt.u32.totalorder %s3290_s18, %s3985_s4 }
  0x2b   :  { %p3296_p4 = pnand %p3294_p3, %p3291_p2 }
  0x2d   :  { %3299 = shalt.err (!%p3296_p4)
}
  0x2e   :  { %s3300_s0 = scalar_lea.vmem %s53_s11, 3072  ;;  %p3305_p6 = scmp.lt.s32.totalorder %s53_s11, %s53_s11 }
  0x2f   :  { %p3301_p5 = scmp.ne.s32.totalorder %s53_s11, %s3300_s0  ;;  %p3306_p7 = scmp.lt.s32.totalorder %s3300_s0, %s3300_s0 }
  0x31   :  { %p3307_p8 = por %p3306_p7, %p3305_p6 }
  0x33   :  { %p3308_p9 = pnand %p3307_p8, %p3301_p5 }
  0x35   :  { %3311 = shalt.err (!%p3308_p9)
}
  0x36   :  { %58 = dma.hbm_to_vmem [thread:$0]  %s3985_s4, 3072, %s53_s11, [#allocation6], %s3389_s15, %s3389_s15, %s3390_s16  }
  0x37   :  { %s3312_s27 = scalar_lea.hbm %s3986_s5, 64 }
  0x38   :  { %p3313_p10 = scmp.ne.s32.totalorder %s3986_s5, %s3312_s27  ;;  %p3316_p11 = scmp.lt.u32.totalorder %s3312_s27, %s3986_s5 }
  0x3a   :  { %p3318_p12 = pnand %p3316_p11, %p3313_p10 }
  0x3c   :  { %3321 = shalt.err (!%p3318_p12)
}
  0x3d   :  { %s3322_s10 = scalar_lea.vmem %s66_s13, 64  ;;  %p3327_p0 = scmp.lt.s32.totalorder %s66_s13, %s66_s13 }
  0x3e   :  { %p3323_p13 = scmp.ne.s32.totalorder %s66_s13, %s3322_s10  ;;  %p3328_p1 = scmp.lt.s32.totalorder %s3322_s10, %s3322_s10 }
  0x40   :  { %p3329_p2 = por %p3328_p1, %p3327_p0 }
  0x42   :  { %p3330_p3 = pnand %p3329_p2, %p3323_p13 }
  0x44   :  { %3333 = shalt.err (!%p3330_p3)
}
  0x45   :  { %68 = dma.hbm_to_vmem [thread:$0]  %s3986_s5, 64, %s66_s13, [#allocation9]  }
  0x46   :  { %3378 = dma.done.wait [#allocation3], 128  }
  0x47   :  { %3379 = vsyncadd [#allocation3], 4294967168 }
  0x48   :  { %3380 = dma.done.wait [#allocation6], 10240  }
  0x49   :  { %3381 = vsyncadd [#allocation6], 4294957056 }
  0x4a   :  { %3382 = dma.done.wait [#allocation9], 64  }
  0x4b   :  { %3383 = vsyncadd [#allocation9], 4294967232  ;;  %v3396_v0 = vmov 0.0|0.0   ;;  %vm3397_vm0 = vmmov 0   ;;  %v3398_v1 = vmov 0.0   ;;  %v171_v2 = vld [vmem:[#allocation5] sm:$0xff] }
  0x4c   :  { %2883 = vmatprep.subr.bf16.mxu1 %v3396_v0  ;;  %2554 = vmatprep.mubr.msk.f32.mxu1 %vm3397_vm0, %v3398_v1  ;;  %v172_v3 = vld [vmem:[#allocation5 + $0x8] sm:$0xff]  ;;  %v173_v4 = vld [vmem:[#allocation5 + $0x10] sm:$0xff]  ;;  %v174_v6 = vld [vmem:[#allocation5 + $0x18] sm:$0xff]  ;;  %vm169_vm1 = vcmask 261120   ;;  %vm184_vm2 = vcmask 523264   ;;  %s3399_s11 = smov 64  }
  0x4d   :  { %2533 = vmatprep.subr.mxu0 %v3398_v1  ;;  %2535 = vmatprep.mubr.msk.f32.mxu0 %vm3397_vm0, %v3398_v1  ;;  %v2884_v5 = vpack.c.bf16 %v172_v3, %v171_v2  ;;  %v2887_v7 = vpack.c.bf16 %v174_v6, %v173_v4  ;;  %v175_v8 = vld [vmem:[#allocation5 + $0x20] sm:$0xff]  ;;  %v176_v9 = vld [vmem:[#allocation5 + $0x28] sm:$0xff]  ;;  %v177_v11 = vld [vmem:[#allocation5 + $0x30] sm:$0xff]  ;;  %vm94_vm3 = vcmask 1042432   ;;  %vm90_vm4 = vcmask 23552   ;;  %s3400_s28 = smov 96  }
  0x4e   :  { %v2890_v10 = vpack.c.bf16 %v176_v9, %v175_v8  ;;  %v178_v12 = vld [vmem:[#allocation5 + $0x38] sm:$0xff]  ;;  %v85_v30 = vld [vmem:[#allocation8] sm:$0x7]  ;;  %v291_v33 = vld [vmem:[#allocation5 + $0x48] sm:$0xff]  ;;  %vm2030_vm5 = vcmask 254976   ;;  %vm2267_vm6 = vcmask 785408  }
  0x4f   :  { %2885 = vmatpush3.bf16.msra.mxu1 %v2884_v5  ;;  %v2893_v13 = vpack.c.bf16 %v178_v12, %v177_v11  ;;  %v168_v14 = vld [vmem:[#allocation2] sm:$0x3]  ;;  %2534 = vmatpush3.msk.msra.mxu0 %vm94_vm3, %v85_v30  ;;  %v290_v32 = vld [vmem:[#allocation5 + $0x40] sm:$0xff]  ;;  %v406_v36 = vld [vmem:[#allocation5 + $0x108] sm:$0xff]  ;;  %s3401_s13 = smov [#allocation10]  }
  0x50   :  { %2886 = vmatprep.subr.bf16.mxu1 %v3396_v0  ;;  %v170_v15 = vsel %vm169_vm1, %v168_v14, 0.0  ;;  %v2318_v16 = vld [vmem:[%s3984_s3] ss:$0 sm:$0xff]  ;;  %v405_v34 = vld [vmem:[#allocation5 + $0x100] sm:$0xff]  ;;  %2895 = vmatprep.subr.bf16.mxu0 %v3396_v0  ;;  %v2896_v35 = vpack.c.bf16 %v291_v33, %v290_v32  ;;  %v292_v37 = vld [vmem:[#allocation5 + $0x50] sm:$0xff] }
  0x51   :  { %v84_v31 = vld [vmem:[%s3982_s1] sm:$0x3]  ;;  %v3530_v39 = vpack.c.bf16 %v406_v36, %v405_v34  ;;  %v407_v40 = vld [vmem:[#allocation5 + $0x110] sm:$0xff]  ;;  %v294_v44 = vld [vmem:[#allocation5 + $0x60] sm:$0xff]  ;;  %s2290_s1 = sshll.u32 %s3401_s13, 4  ;;  %s2291_s1 = int_to_ptr.vmem [resolvable:$true] %s2290_s1 }
  0x52   :  { %2536 = vmatmul.mubr.msk.f32.vlgmr.msra.gmra.mrb[0].mxu0 %vm90_vm4, %v84_v31  ;;  %v293_v38 = vld [vmem:[#allocation5 + $0x58] sm:$0xff]  ;;  %v295_v45 = vld [vmem:[#allocation5 + $0x68] sm:$0xff]  ;;  %v409_v46 = vld [vmem:[#allocation5 + $0x120] sm:$0xff]  ;;  %s3334_s14 = scalar_lea.vmem %s2291_s1, 64  ;;  %p3339_p5 = scmp.lt.s32.totalorder %s2291_s1, %s2291_s1 }
  0x53   :  { %2888 = vmatpush3.bf16.msra.mxu1 %v2887_v7  ;;  %v408_v41 = vld [vmem:[#allocation5 + $0x118] sm:$0xff]  ;;  %2573 = vmatprep.mubr.msk.f32.mxu0 %vm3397_vm0, %v3398_v1  ;;  %v2899_v42 = vpack.c.bf16 %v293_v38, %v292_v37  ;;  %v410_v47 = vld [vmem:[#allocation5 + $0x128] sm:$0xff]  ;;  %v2902_v48 = vpack.c.bf16 %v295_v45, %v294_v44  ;;  %v296_v50 = vld [vmem:[#allocation5 + $0x70] sm:$0xff]  ;;  %p3335_p4 = scmp.ne.s32.totalorder %s2291_s1, %s3334_s14  ;;  %p3340_p6 = scmp.lt.s32.totalorder %s3334_s14, %s3334_s14 }
  0x54   :  { %2889 = vmatprep.subr.bf16.mxu1 %v3396_v0  ;;  %2897 = vmatpush3.bf16.msra.mxu0 %v2896_v35  ;;  %v3536_v43 = vpack.c.bf16 %v408_v41, %v407_v40  ;;  %v3541_v49 = vpack.c.bf16 %v410_v47, %v409_v46  ;;  %v297_v51 = vld [vmem:[#allocation5 + $0x78] sm:$0xff]  ;;  %v411_v53 = vld [vmem:[#allocation5 + $0x130] sm:$0xff]  ;;  %v523_v33 = vld [vmem:[#allocation5 + $0x80] sm:$0xff] }
  0x55   :  { %2898 = vmatprep.subr.bf16.mxu0 %v3396_v0  ;;  %v412_v54 = vld [vmem:[#allocation5 + $0x138] sm:$0xff]  ;;  %v2905_v55 = vpack.c.bf16 %v297_v51, %v296_v50  ;;  %v524_v34 = vld [vmem:[#allocation5 + $0x88] sm:$0xff]  ;;  %v525_v35 = vld [vmem:[#allocation5 + $0x90] sm:$0xff]  ;;  %p3341_p7 = por %p3340_p6, %p3339_p5 }
  0x56   :  { %v3547_v56 = vpack.c.bf16 %v412_v54, %v411_v53  ;;  %v283_v61 = vld [vmem:[#allocation2 + $0x2] sm:$0x3]  ;;  %v2321_v4 = vld [vmem:[%s3984_s3 + $0x1] ss:$0 sm:$0xff]  ;;  %v3579_v5 = vld [vmem:[%s3984_s3 + $0x4] ss:$0 sm:$0xff]  ;;  %v2920_v36 = vpack.c.bf16 %v524_v34, %v523_v33 }
  0x57   :  { %2891 = vmatpush3.bf16.msra.mxu1 %v2890_v10  ;;  %v526_v37 = vld [vmem:[#allocation5 + $0x98] sm:$0xff]  ;;  %v528_v40 = vld [vmem:[#allocation5 + $0xa8] sm:$0xff]  ;;  %v529_v45 = vld [vmem:[#allocation5 + $0xb0] sm:$0xff]  ;;  %p3342_p8 = pnand %p3341_p7, %p3335_p4 }
  0x58   :  { %2892 = vmatprep.subr.bf16.mxu1 %v3396_v0  ;;  %2900 = vmatpush3.bf16.msra.mxu0 %v2899_v42  ;;  %v2923_v38 = vpack.c.bf16 %v526_v37, %v525_v35  ;;  %v530_v46 = vld [vmem:[#allocation5 + $0xb8] sm:$0xff]  ;;  %v743_v53 = vld [vmem:[#allocation5 + $0x140] sm:$0xff]  ;;  %v744_v54 = vld [vmem:[#allocation5 + $0x148] sm:$0xff] }
  0x59   :  { %2901 = vmatprep.subr.bf16.mxu0 %v3396_v0  ;;  %v2929_v47 = vpack.c.bf16 %v530_v46, %v529_v45 }
  0x5b   :  { %2894 = vmatpush3.bf16.msra.mxu1 %v2893_v13 }
  0x5c   :  { %2907 = vmatprep.subr.bf16.mxu1 %v3396_v0  ;;  %2903 = vmatpush3.bf16.msra.mxu0 %v2902_v48 }
  0x5d   :  { %2904 = vmatprep.subr.bf16.mxu0 %v3396_v0 }
  0x5e   :  { %2555 = vmatmul.mubr.msk.f32.vlgmr.msra.gmra.mrb[0].mxu1 %vm184_vm2, %v170_v15 }
  0x5f   :  { %2592 = vmatprep.mubr.msk.f32.mxu1 %vm3397_vm0, %v3398_v1  ;;  %2909 = vmatpush3.bf16.msra.mxu1 %v3530_v39 }
  0x60   :  { %2910 = vmatprep.subr.bf16.mxu1 %v3396_v0  ;;  %2906 = vmatpush3.bf16.msra.mxu0 %v2905_v55  ;;  %v516_v55 = vld [vmem:[#allocation2 + $0x4] sm:$0x3] }
  0x61   :  { %2919 = vmatprep.subr.bf16.mxu0 %v3396_v0 }
  0x63   :  { %2912 = vmatpush3.bf16.msra.mxu1 %v3536_v43 }
  0x64   :  { %2913 = vmatprep.subr.bf16.mxu1 %v3396_v0 }
  0x67   :  { %2915 = vmatpush3.bf16.msra.mxu1 %v3541_v49 }
  0x68   :  { %2916 = vmatprep.subr.bf16.mxu1 %v3396_v0 }
  0x6b   :  { %2918 = vmatpush3.bf16.msra.mxu1 %v3547_v56 }
  0x6c   :  { %2931 = vmatprep.subr.bf16.mxu1 %v3396_v0 }
 0x125   :  { %v3555_v59 = vpop.f32.mrb[0].mxu0 }
 0x126   :  { %v2537_v60 = vpop.f32.mrb[1].mxu0 }
 0x127   :  { %v745_v60 = vld [vmem:[#allocation5 + $0x150] sm:$0xff] }
 0x131   :  { %v254_v17 = vpop.f32.mrb[0].mxu1 }
 0x132   :  { %v255_v18 = vadd.f32 %v2318_v16, %v254_v17  ;;  %v2556_v19 = vpop.f32.mrb[1].mxu1 }
 0x134   :  { %3114 = vtanh.f32 %v255_v18  ;;  %v2320_v21 = vmul.f32 -1.442695, %v255_v18 }
 0x136   :  { %3116 = vpow2.f32 %v2320_v21 }
 0x13e   :  { %v3115_v20 = vpop.eup %3114 }
 0x13f   :  { %267 = vrot.lane.b32.xlu0 %v3115_v20, %s3399_s11 }
 0x140   :  { %v3117_v22 = vpop.eup %3116 }
 0x141   :  { %v261_v23 = vadd.f32 1.0, %v3117_v22 }
 0x143   :  { %3118 = vrcp.f32 %v261_v23 }
 0x14d   :  { %v3119_v24 = vpop.eup %3118 }
 0x14e   :  { %v265_v27 = vmul.f32 0.0, %v3119_v24 }
 0x1b1   :  { %v268_v25 = vpop.permute.xlu0 %267 }
 0x1b2   :  { %v270_v26 = vmul.f32 %v3119_v24, %v268_v25 }
 0x1b4   :  { %272 = vrot.lane.b32.xlu0 %v270_v26, %s3392_s2 }
 0x226   :  { %v273_v28 = vpop.permute.xlu0 %272 }
 0x227   :  { %v3523_v29 = vadd.f32 %v273_v28, %v265_v27 }
 0x229   :  { %3120 = vtanh.f32 %v3523_v29 }
 0x233   :  { %v3121_v52 = vpop.eup %3120 }
 0x234   :  { %278 = vrot.lane.b32.xlu1 %v3121_v52, %s3399_s11 }
 0x2a6   :  { %v279_v57 = vpop.permute.xlu1 %278 }
 0x2a7   :  { %v281_v58 = vmul.f32 %v3119_v24, %v279_v57  ;;  %v3603_v57 = vpack.c.bf16 %v744_v54, %v743_v53 }
 0x2a9   :  { %400 = vrot.lane.b32.xlu0 %v281_v58, %s3392_s2  ;;  %285 = vrot.lane.b32.xlu1 %v281_v58, %s3399_s11 }
 0x31b   :  { %v401_v62 = vpop.permute.xlu0 %400  ;;  %v286_v63 = vpop.permute.xlu1 %285 }
 0x31c   :  { %v403_v2 = vsel %vm169_vm1, %v401_v62, 0.0  ;;  %v288_v3 = vsel %vm169_vm1, %v283_v61, %v286_v63  ;;  %v746_v61 = vld [vmem:[#allocation5 + $0x158] sm:$0xff] }
 0x31d   :  { %2574 = vmatmul.mubr.msk.f32.vlgmr.msra.gmra.mrb[2].mxu0 %vm184_vm2, %v288_v3  ;;  %2593 = vmatmul.mubr.msk.f32.vlgmr.msra.gmra.mrb[2].mxu1 %vm184_vm2, %v403_v2  ;;  %v3608_v63 = vpack.c.bf16 %v746_v61, %v745_v60 }
 0x31e   :  { %2933 = vmatpush3.bf16.msra.mxu1 %v3530_v39  ;;  %2611 = vmatprep.mubr.msk.f32.mxu0 %vm3397_vm0, %v3398_v1 }
 0x31f   :  { %2934 = vmatprep.subr.bf16.mxu1 %v3396_v0  ;;  %2630 = vmatprep.mubr.msk.f32.mxu1 %vm3397_vm0, %v3398_v1 }
 0x320   :  { %2921 = vmatpush3.bf16.msra.mxu0 %v2920_v36 }
 0x321   :  { %2922 = vmatprep.subr.bf16.mxu0 %v3396_v0 }
 0x322   :  { %2936 = vmatpush3.bf16.msra.mxu1 %v3536_v43 }
 0x323   :  { %2937 = vmatprep.subr.bf16.mxu1 %v3396_v0 }
 0x324   :  { %2924 = vmatpush3.bf16.msra.mxu0 %v2923_v38 }
 0x325   :  { %2925 = vmatprep.subr.bf16.mxu0 %v3396_v0 }
 0x326   :  { %2939 = vmatpush3.bf16.msra.mxu1 %v3541_v49 }
 0x327   :  { %2940 = vmatprep.subr.bf16.mxu1 %v3396_v0 }
 0x32a   :  { %2942 = vmatpush3.bf16.msra.mxu1 %v3547_v56 }
 0x32b   :  { %2955 = vmatprep.subr.bf16.mxu1 %v3396_v0 }
 0x3f0   :  { %v372_v6 = vpop.f32.mrb[2].mxu0  ;;  %v487_v7 = vpop.f32.mrb[2].mxu1 }
 0x3f1   :  { %v373_v8 = vadd.f32 %v2321_v4, %v372_v6  ;;  %v488_v9 = vadd.f32 %v3579_v5, %v487_v7  ;;  %v2575_v10 = vpop.f32.mrb[3].mxu0  ;;  %v2594_v11 = vpop.f32.mrb[3].mxu1  ;;  %v747_v4 = vld [vmem:[#allocation5 + $0x160] sm:$0xff]  ;;  %v748_v6 = vld [vmem:[#allocation5 + $0x168] sm:$0xff] }
 0x3f2   :  { %v750_v10 = vld [vmem:[#allocation5 + $0x178] sm:$0xff] }
 0x3f3   :  { %3122 = vtanh.f32 %v373_v8  ;;  %v2323_v14 = vmul.f32 -1.442695, %v373_v8  ;;  %v2326_v15 = vmul.f32 -1.442695, %v488_v9  ;;  %v3616_v8 = vpack.c.bf16 %v748_v6, %v747_v4  ;;  %v862_v4 = vld [vmem:[#allocation5 + $0xc8] sm:$0xff] }
 0x3f4   :  { %3124 = vtanh.f32 %v488_v9  ;;  %v749_v9 = vld [vmem:[#allocation5 + $0x170] sm:$0xff] }
 0x3f5   :  { %3126 = vpow2.f32 %v2323_v14  ;;  %v3622_v11 = vpack.c.bf16 %v750_v10, %v749_v9  ;;  %v2327_v14 = vld [vmem:[%s3984_s3 + $0x2] ss:$0 sm:$0xff]  ;;  %v865_v10 = vld [vmem:[#allocation5 + $0xe0] sm:$0xff] }
 0x3f6   :  { %3128 = vpow2.f32 %v2326_v15 }
 0x3fd   :  { %v3123_v12 = vpop.eup %3122 }
 0x3fe   :  { %v3125_v13 = vpop.eup %3124  ;;  %385 = vrot.lane.b32.xlu1 %v3123_v12, %s3399_s11 }
 0x3ff   :  { %500 = vrot.lane.b32.xlu0 %v3125_v13, %s3399_s11  ;;  %v3127_v16 = vpop.eup %3126 }
 0x400   :  { %v3129_v17 = vpop.eup %3128  ;;  %v379_v18 = vadd.f32 1.0, %v3127_v16 }
 0x401   :  { %v494_v19 = vadd.f32 1.0, %v3129_v17 }
 0x402   :  { %3130 = vrcp.f32 %v379_v18 }
 0x403   :  { %3132 = vrcp.f32 %v494_v19 }
 0x40c   :  { %v3131_v20 = vpop.eup %3130 }
 0x40d   :  { %v3133_v22 = vpop.eup %3132  ;;  %v383_v26 = vmul.f32 %v3131_v20, %v3523_v29  ;;  %v527_v29 = vld [vmem:[#allocation5 + $0xa0] sm:$0xff] }
 0x40e   :  { %v498_v27 = vmul.f32 0.0, %v3133_v22  ;;  %v2926_v44 = vpack.c.bf16 %v528_v40, %v527_v29 }
 0x410   :  { %2927 = vmatpush3.bf16.msra.mxu0 %v2926_v44 }
 0x411   :  { %2928 = vmatprep.subr.bf16.mxu0 %v3396_v0 }
 0x414   :  { %2930 = vmatpush3.bf16.msra.mxu0 %v2929_v47 }
 0x415   :  { %2943 = vmatprep.subr.bf16.mxu0 %v3396_v0 }
 0x470   :  { %v386_v21 = vpop.permute.xlu1 %385 }
 0x471   :  { %v501_v23 = vpop.permute.xlu0 %500  ;;  %v388_v24 = vmul.f32 %v3131_v20, %v386_v21 }
 0x472   :  { %v503_v25 = vmul.f32 %v3133_v22, %v501_v23 }
 0x473   :  { %390 = vrot.lane.b32.xlu1 %v388_v24, %s3392_s2 }
 0x474   :  { %505 = vrot.lane.b32.xlu0 %v503_v25, %s3392_s2 }
 0x4e5   :  { %v391_v28 = vpop.permute.xlu1 %390 }
 0x4e6   :  { %v506_v30 = vpop.permute.xlu0 %505  ;;  %v3587_v31 = vadd.f32 %v391_v28, %v383_v26 }
 0x4e7   :  { %v3589_v32 = vadd.f32 %v506_v30, %v498_v27 }
 0x4e8   :  { %3134 = vtanh.f32 %v3587_v31 }
 0x4e9   :  { %3136 = vtanh.f32 %v3589_v32 }
 0x4f2   :  { %v3135_v41 = vpop.eup %3134 }
 0x4f3   :  { %v3137_v42 = vpop.eup %3136  ;;  %396 = vrot.lane.b32.xlu1 %v3135_v41, %s3399_s11 }
 0x4f4   :  { %511 = vrot.lane.b32.xlu0 %v3137_v42, %s3399_s11 }
 0x565   :  { %v397_v48 = vpop.permute.xlu1 %396 }
 0x566   :  { %v399_v50 = vmul.f32 %v3131_v20, %v397_v48  ;;  %v512_v51 = vpop.permute.xlu0 %511 }
 0x567   :  { %v514_v52 = vmul.f32 %v3133_v22, %v512_v51  ;;  %v3647_v22 = vld [vmem:[%s3984_s3 + $0x5] ss:$0 sm:$0xff] }
 0x568   :  { %633 = vrot.lane.b32.xlu0 %v399_v50, %s3392_s2  ;;  %518 = vrot.lane.b32.xlu1 %v399_v50, %s3399_s11 }
 0x56c   :  { %738 = vrot.lane.b32.xlu0 %v514_v52, %s3392_s2  ;;  %637 = vrot.lane.b32.xlu1 %v514_v52, %s3399_s11 }
 0x5da   :  { %v519_v58 = vpop.permute.xlu1 %518  ;;  %v634_v2 = vpop.permute.xlu0 %633 }
 0x5db   :  { %v521_v62 = vsel %vm169_vm1, %v516_v55, %v519_v58 }
 0x5dc   :  { %2612 = vmatmul.mubr.msk.f32.vlgmr.msra.gmra.mrb[4].mxu0 %vm184_vm2, %v521_v62 }
 0x5dd   :  { %2945 = vmatpush3.bf16.msra.mxu0 %v3603_v57  ;;  %2649 = vmatprep.mubr.msk.f32.mxu0 %vm3397_vm0, %v3398_v1 }
 0x5de   :  { %v638_v3 = vpop.permute.xlu1 %637  ;;  %2946 = vmatprep.subr.bf16.mxu0 %v3396_v0  ;;  %v739_v12 = vpop.permute.xlu0 %738 }
 0x5df   :  { %v640_v7 = vsel %vm169_vm1, %v634_v2, %v638_v3  ;;  %v741_v13 = vsel %vm169_vm1, %v739_v12, 0.0  ;;  %v866_v12 = vld [vmem:[#allocation5 + $0xe8] sm:$0xff] }
 0x5e0   :  { %2631 = vmatmul.mubr.msk.f32.vlgmr.msra.gmra.mrb[4].mxu1 %vm184_vm2, %v640_v7  ;;  %v864_v7 = vld [vmem:[#allocation5 + $0xd8] sm:$0xff] }
 0x5e1   :  { %2948 = vmatpush3.bf16.msra.mxu0 %v3608_v63  ;;  %2668 = vmatprep.mubr.msk.f32.mxu1 %vm3397_vm0, %v3398_v1 }
 0x5e2   :  { %2949 = vmatprep.subr.bf16.mxu0 %v3396_v0 }
 0x5e5   :  { %2951 = vmatpush3.bf16.msra.mxu0 %v3616_v8 }
 0x5e6   :  { %2952 = vmatprep.subr.bf16.mxu0 %v3396_v0 }
 0x5e9   :  { %2954 = vmatpush3.bf16.msra.mxu0 %v3622_v11 }
 0x5ea   :  { %2967 = vmatprep.subr.bf16.mxu0 %v3396_v0 }
 0x5ec   :  { %2650 = vmatmul.mubr.msk.f32.vlgmr.msra.gmra.mrb[6].mxu0 %vm184_vm2, %v741_v13  ;;  %v2962_v13 = vpack.c.bf16 %v866_v12, %v865_v10 }
 0x5ed   :  { %2969 = vmatpush3.bf16.msra.mxu0 %v3530_v39  ;;  %2687 = vmatprep.mubr.msk.f32.mxu0 %vm3397_vm0, %v3398_v1 }
 0x5ee   :  { %2970 = vmatprep.subr.bf16.mxu0 %v3396_v0 }
 0x5f1   :  { %2972 = vmatpush3.bf16.msra.mxu0 %v3536_v43 }
 0x5f2   :  { %2973 = vmatprep.subr.bf16.mxu0 %v3396_v0 }
 0x5f5   :  { %2975 = vmatpush3.bf16.msra.mxu0 %v3541_v49 }
 0x5f6   :  { %2976 = vmatprep.subr.bf16.mxu0 %v3396_v0 }
 0x5f9   :  { %2978 = vmatpush3.bf16.msra.mxu0 %v3547_v56 }
 0x5fa   :  { %2991 = vmatprep.subr.bf16.mxu0 %v3396_v0 }
 0x6af   :  { %v605_v15 = vpop.f32.mrb[4].mxu0 }
 0x6b0   :  { %v606_v16 = vadd.f32 %v2327_v14, %v605_v15  ;;  %v2613_v17 = vpop.f32.mrb[5].mxu0  ;;  %v867_v14 = vld [vmem:[#allocation5 + $0xf0] sm:$0xff]  ;;  %v868_v15 = vld [vmem:[#allocation5 + $0xf8] sm:$0xff] }
 0x6b1   :  { %v2965_v17 = vpack.c.bf16 %v868_v15, %v867_v14 }
 0x6b2   :  { %3138 = vtanh.f32 %v606_v16  ;;  %v2329_v28 = vmul.f32 -1.442695, %v606_v16 }
 0x6b3   :  { %v710_v18 = vpop.f32.mrb[4].mxu1 }
 0x6b4   :  { %v711_v19 = vadd.f32 %v3579_v5, %v710_v18  ;;  %v2632_v20 = vpop.f32.mrb[5].mxu1 }
 0x6b6   :  { %3140 = vtanh.f32 %v711_v19  ;;  %v2331_v30 = vmul.f32 -1.442695, %v711_v19 }
 0x6bc   :  { %v3139_v21 = vpop.eup %3138 }
 0x6bd   :  { %618 = vrot.lane.b32.xlu1 %v3139_v21, %s3399_s11 }
 0x6bf   :  { %v825_v23 = vpop.f32.mrb[6].mxu0 }
 0x6c0   :  { %v3141_v24 = vpop.eup %3140  ;;  %v826_v25 = vadd.f32 %v3647_v22, %v825_v23  ;;  %v2651_v26 = vpop.f32.mrb[7].mxu0 }
 0x6c1   :  { %723 = vrot.lane.b32.xlu0 %v3141_v24, %s3399_s11 }
 0x6c2   :  { %3142 = vtanh.f32 %v826_v25  ;;  %v2334_v34 = vmul.f32 -1.442695, %v826_v25  ;;  %v854_v25 = vld [vmem:[#allocation2 + $0x6] sm:$0x3] }
 0x6c3   :  { %3144 = vpow2.f32 %v2329_v28  ;;  %v1187_v28 = vld [vmem:[#allocation5 + $0x188] sm:$0xff] }
 0x6c4   :  { %3146 = vpow2.f32 %v2331_v30 }
 0x6c5   :  { %3148 = vpow2.f32 %v2334_v34 }
 0x6cc   :  { %v3143_v27 = vpop.eup %3142 }
 0x6cd   :  { %838 = vrot.lane.b32.xlu1 %v3143_v27, %s3399_s11  ;;  %v3145_v33 = vpop.eup %3144  ;;  %v1186_v27 = vld [vmem:[#allocation5 + $0x180] sm:$0xff] }
 0x6ce   :  { %v612_v35 = vadd.f32 1.0, %v3145_v33  ;;  %v3147_v36 = vpop.eup %3146  ;;  %v3682_v33 = vpack.c.bf16 %v1187_v28, %v1186_v27 }
 0x6cf   :  { %v717_v37 = vadd.f32 1.0, %v3147_v36  ;;  %v3149_v38 = vpop.eup %3148  ;;  %v1188_v36 = vld [vmem:[#allocation5 + $0x190] sm:$0xff] }
 0x6d0   :  { %3150 = vrcp.f32 %v612_v35  ;;  %v832_v42 = vadd.f32 1.0, %v3149_v38 }
 0x6d1   :  { %3152 = vrcp.f32 %v717_v37  ;;  %v1189_v37 = vld [vmem:[#allocation5 + $0x198] sm:$0xff] }
 0x6d2   :  { %3154 = vrcp.f32 %v832_v42 }
 0x6da   :  { %v3151_v29 = vpop.eup %3150 }
 0x6db   :  { %v3153_v44 = vpop.eup %3152  ;;  %v616_v51 = vmul.f32 %v3151_v29, %v3587_v31  ;;  %v861_v31 = vld [vmem:[#allocation5 + $0xc0] sm:$0xff] }
 0x6dc   :  { %v3155_v47 = vpop.eup %3154  ;;  %v721_v54 = vmul.f32 %v3153_v44, %v3589_v32  ;;  %v863_v32 = vld [vmem:[#allocation5 + $0xd0] sm:$0xff]  ;;  %v2956_v6 = vpack.c.bf16 %v862_v4, %v861_v31 }
 0x6dd   :  { %v836_v61 = vmul.f32 0.0, %v3155_v47  ;;  %v2959_v9 = vpack.c.bf16 %v864_v7, %v863_v32  ;;  %v3745_v32 = vld [vmem:[%s3984_s3 + $0x6] ss:$0 sm:$0xff] }
 0x6de   :  { %2957 = vmatpush3.bf16.msra.mxu1 %v2956_v6 }
 0x6df   :  { %2958 = vmatprep.subr.bf16.mxu1 %v3396_v0 }
 0x6e2   :  { %2960 = vmatpush3.bf16.msra.mxu1 %v2959_v9 }
 0x6e3   :  { %2961 = vmatprep.subr.bf16.mxu1 %v3396_v0 }
 0x6e6   :  { %2963 = vmatpush3.bf16.msra.mxu1 %v2962_v13 }
 0x6e7   :  { %2964 = vmatprep.subr.bf16.mxu1 %v3396_v0 }
 0x6ea   :  { %2966 = vmatpush3.bf16.msra.mxu1 %v2965_v17 }
 0x6eb   :  { %2979 = vmatprep.subr.bf16.mxu1 %v3396_v0 }
 0x72f   :  { %v619_v40 = vpop.permute.xlu1 %618 }
 0x730   :  { %v621_v41 = vmul.f32 %v3151_v29, %v619_v40  ;;  %v1190_v40 = vld [vmem:[#allocation5 + $0x1a0] sm:$0xff] }
 0x732   :  { %623 = vrot.lane.b32.xlu0 %v621_v41, %s3392_s2  ;;  %v1191_v41 = vld [vmem:[#allocation5 + $0x1a8] sm:$0xff] }
 0x733   :  { %v724_v45 = vpop.permute.xlu0 %723  ;;  %v3699_v42 = vpack.c.bf16 %v1191_v41, %v1190_v40 }
 0x734   :  { %v726_v46 = vmul.f32 %v3153_v44, %v724_v45  ;;  %v1193_v45 = vld [vmem:[#allocation5 + $0x1b8] sm:$0xff] }
 0x736   :  { %728 = vrot.lane.b32.xlu1 %v726_v46, %s3392_s2 }
 0x73f   :  { %v839_v48 = vpop.permute.xlu1 %838 }
 0x740   :  { %v841_v50 = vmul.f32 %v3155_v47, %v839_v48 }
 0x742   :  { %843 = vrot.lane.b32.xlu0 %v841_v50, %s3392_s2 }
 0x7a4   :  { %v624_v52 = vpop.permute.xlu0 %623 }
 0x7a5   :  { %v3656_v53 = vadd.f32 %v624_v52, %v616_v51 }
 0x7a7   :  { %3156 = vtanh.f32 %v3656_v53 }
 0x7a8   :  { %v729_v55 = vpop.permute.xlu1 %728 }
 0x7a9   :  { %v3660_v58 = vadd.f32 %v729_v55, %v721_v54 }
 0x7ab   :  { %3158 = vtanh.f32 %v3660_v58 }
 0x7b1   :  { %v3157_v60 = vpop.eup %3156 }
 0x7b2   :  { %629 = vrot.lane.b32.xlu1 %v3157_v60, %s3399_s11 }
 0x7b4   :  { %v844_v62 = vpop.permute.xlu0 %843 }
 0x7b5   :  { %v3159_v2 = vpop.eup %3158  ;;  %v3664_v3 = vadd.f32 %v844_v62, %v836_v61 }
 0x7b6   :  { %734 = vrot.lane.b32.xlu0 %v3159_v2, %s3399_s11 }
 0x7b7   :  { %3160 = vtanh.f32 %v3664_v3 }
 0x7c1   :  { %v3161_v16 = vpop.eup %3160 }
 0x7c2   :  { %849 = vrot.lane.b32.xlu1 %v3161_v16, %s3399_s11 }
 0x824   :  { %v630_v18 = vpop.permute.xlu1 %629 }
 0x825   :  { %v632_v19 = vmul.f32 %v3151_v29, %v630_v18  ;;  %v3691_v29 = vpack.c.bf16 %v1189_v37, %v1188_v36 }
 0x827   :  { %856 = vrot.lane.b32.xlu0 %v632_v19, %s3399_s11  ;;  %971 = vrot.lane.b32.xlu1 %v632_v19, %s3392_s2 }
 0x828   :  { %v735_v20 = vpop.permute.xlu0 %734 }
 0x829   :  { %v737_v21 = vmul.f32 %v3153_v44, %v735_v20  ;;  %v1192_v44 = vld [vmem:[#allocation5 + $0x1b0] sm:$0xff] }
 0x82b   :  { %975 = vrot.lane.b32.xlu0 %v737_v21, %s3399_s11  ;;  %1076 = vrot.lane.b32.xlu1 %v737_v21, %s3392_s2 }
 0x834   :  { %v850_v23 = vpop.permute.xlu1 %849 }
 0x835   :  { %v852_v24 = vmul.f32 %v3155_v47, %v850_v23  ;;  %v3705_v47 = vpack.c.bf16 %v1193_v45, %v1192_v44 }
 0x837   :  { %1181 = vrot.lane.b32.xlu1 %v852_v24, %s3392_s2  ;;  %1080 = vrot.lane.b32.xlu0 %v852_v24, %s3399_s11 }
 0x899   :  { %v857_v26 = vpop.permute.xlu0 %856  ;;  %v972_v34 = vpop.permute.xlu1 %971 }
 0x89a   :  { %v859_v30 = vsel %vm169_vm1, %v854_v25, %v857_v26 }
 0x89b   :  { %2669 = vmatmul.mubr.msk.f32.vlgmr.msra.gmra.mrb[6].mxu1 %vm184_vm2, %v859_v30 }
 0x89c   :  { %2981 = vmatpush3.bf16.msra.mxu1 %v3603_v57  ;;  %2706 = vmatprep.mubr.msk.f32.mxu1 %vm3397_vm0, %v3398_v1 }
 0x89d   :  { %v976_v35 = vpop.permute.xlu0 %975  ;;  %2982 = vmatprep.subr.bf16.mxu1 %v3396_v0  ;;  %v1077_v46 = vpop.permute.xlu1 %1076 }
 0x89e   :  { %v978_v38 = vsel %vm169_vm1, %v972_v34, %v976_v35 }
 0x89f   :  { %2688 = vmatmul.mubr.msk.f32.vlgmr.msra.gmra.mrb[8].mxu0 %vm184_vm2, %v978_v38 }
 0x8a0   :  { %2984 = vmatpush3.bf16.msra.mxu1 %v3608_v63  ;;  %2993 = vmatpush3.bf16.msra.mxu0 %v3682_v33 }
 0x8a1   :  { %2985 = vmatprep.subr.bf16.mxu1 %v3396_v0  ;;  %2994 = vmatprep.subr.bf16.mxu0 %v3396_v0 }
 0x8a2   :  { %2725 = vmatprep.mubr.msk.f32.mxu0 %vm3397_vm0, %v3398_v1 }
 0x8a4   :  { %2987 = vmatpush3.bf16.msra.mxu1 %v3616_v8  ;;  %2996 = vmatpush3.bf16.msra.mxu0 %v3691_v29 }
 0x8a5   :  { %2988 = vmatprep.subr.bf16.mxu1 %v3396_v0  ;;  %2997 = vmatprep.subr.bf16.mxu0 %v3396_v0 }
 0x8a8   :  { %2990 = vmatpush3.bf16.msra.mxu1 %v3622_v11  ;;  %2999 = vmatpush3.bf16.msra.mxu0 %v3699_v42 }
 0x8a9   :  { %v1081_v48 = vpop.permute.xlu0 %1080  ;;  %3000 = vmatprep.subr.bf16.mxu0 %v3396_v0  ;;  %3003 = vmatprep.subr.bf16.mxu1 %v3396_v0  ;;  %v1182_v51 = vpop.permute.xlu1 %1181 }
 0x8aa   :  { %v1083_v50 = vsel %vm169_vm1, %v1077_v46, %v1081_v48  ;;  %v1184_v52 = vsel %vm169_vm1, %v1182_v51, 0.0 }
 0x8ab   :  { %2707 = vmatmul.mubr.msk.f32.vlgmr.msra.gmra.mrb[8].mxu1 %vm184_vm2, %v1083_v50 }
 0x8ac   :  { %3002 = vmatpush3.bf16.msra.mxu0 %v3705_v47  ;;  %3005 = vmatpush3.bf16.msra.mxu1 %v3530_v39  ;;  %v2335_v39 = vld [vmem:[%s3984_s3 + $0x3] ss:$0 sm:$0xff] }
 0x8ad   :  { %3006 = vmatprep.subr.bf16.mxu1 %v3396_v0  ;;  %3015 = vmatprep.subr.bf16.mxu0 %v3396_v0 }
 0x8ae   :  { %2744 = vmatprep.mubr.msk.f32.mxu1 %vm3397_vm0, %v3398_v1 }
 0x8af   :  { %2726 = vmatmul.mubr.msk.f32.vlgmr.msra.gmra.mrb[10].mxu0 %vm184_vm2, %v1184_v52 }
 0x8b0   :  { %3008 = vmatpush3.bf16.msra.mxu1 %v3536_v43  ;;  %3017 = vmatpush3.bf16.msra.mxu0 %v3603_v57 }
 0x8b1   :  { %3009 = vmatprep.subr.bf16.mxu1 %v3396_v0  ;;  %3018 = vmatprep.subr.bf16.mxu0 %v3396_v0 }
 0x8b2   :  { %2763 = vmatprep.mubr.msk.f32.mxu0 %vm3397_vm0, %v3398_v1 }
 0x8b4   :  { %3011 = vmatpush3.bf16.msra.mxu1 %v3541_v49  ;;  %3020 = vmatpush3.bf16.msra.mxu0 %v3608_v63 }
 0x8b5   :  { %3012 = vmatprep.subr.bf16.mxu1 %v3396_v0  ;;  %3021 = vmatprep.subr.bf16.mxu0 %v3396_v0 }
 0x8b8   :  { %3014 = vmatpush3.bf16.msra.mxu1 %v3547_v56  ;;  %3023 = vmatpush3.bf16.msra.mxu0 %v3616_v8 }
 0x8b9   :  { %3027 = vmatprep.subr.bf16.mxu1 %v3396_v0  ;;  %3024 = vmatprep.subr.bf16.mxu0 %v3396_v0 }
 0x8bc   :  { %3026 = vmatpush3.bf16.msra.mxu0 %v3622_v11 }
 0x8bd   :  { %3039 = vmatprep.subr.bf16.mxu0 %v3396_v0 }
 0x96e   :  { %v943_v43 = vpop.f32.mrb[6].mxu1 }
 0x96f   :  { %v944_v49 = vadd.f32 %v2335_v39, %v943_v43  ;;  %v2670_v54 = vpop.f32.mrb[7].mxu1 }
 0x971   :  { %3162 = vtanh.f32 %v944_v49  ;;  %v2337_v13 = vmul.f32 -1.442695, %v944_v49 }
 0x972   :  { %v1048_v55 = vpop.f32.mrb[8].mxu0 }
 0x973   :  { %v1049_v56 = vadd.f32 %v3579_v5, %v1048_v55  ;;  %v2689_v60 = vpop.f32.mrb[9].mxu0 }
 0x975   :  { %3164 = vtanh.f32 %v1049_v56  ;;  %v2339_v14 = vmul.f32 -1.442695, %v1049_v56 }
 0x97b   :  { %v3163_v61 = vpop.eup %3162 }
 0x97c   :  { %956 = vrot.lane.b32.xlu0 %v3163_v61, %s3399_s11 }
 0x97e   :  { %v1153_v62 = vpop.f32.mrb[8].mxu1 }
 0x97f   :  { %v3165_v2 = vpop.eup %3164  ;;  %v1154_v31 = vadd.f32 %v3647_v22, %v1153_v62  ;;  %v2708_v4 = vpop.f32.mrb[9].mxu1 }
 0x980   :  { %1061 = vrot.lane.b32.xlu1 %v3165_v2, %s3399_s11 }
 0x981   :  { %3166 = vtanh.f32 %v1154_v31  ;;  %v2341_v16 = vmul.f32 -1.442695, %v1154_v31 }
 0x982   :  { %v1268_v6 = vpop.f32.mrb[10].mxu0 }
 0x983   :  { %v1269_v7 = vadd.f32 %v3745_v32, %v1268_v6  ;;  %v2727_v9 = vpop.f32.mrb[11].mxu0 }
 0x985   :  { %3168 = vtanh.f32 %v1269_v7  ;;  %v2344_v19 = vmul.f32 -1.442695, %v1269_v7 }
 0x986   :  { %3170 = vpow2.f32 %v2337_v13 }
 0x987   :  { %3172 = vpow2.f32 %v2339_v14 }
 0x988   :  { %3174 = vpow2.f32 %v2341_v16 }
 0x98b   :  { %v3167_v10 = vpop.eup %3166 }
 0x98c   :  { %1166 = vrot.lane.b32.xlu0 %v3167_v10, %s3399_s11 }
 0x98f   :  { %v3169_v12 = vpop.eup %3168 }
 0x990   :  { %1281 = vrot.lane.b32.xlu1 %v3169_v12, %s3399_s11  ;;  %v3171_v15 = vpop.eup %3170 }
 0x991   :  { %v950_v17 = vadd.f32 1.0, %v3171_v15  ;;  %v3173_v18 = vpop.eup %3172 }
 0x992   :  { %v1055_v20 = vadd.f32 1.0, %v3173_v18  ;;  %v3175_v21 = vpop.eup %3174 }
 0x993   :  { %3176 = vrcp.f32 %v950_v17  ;;  %v1160_v26 = vadd.f32 1.0, %v3175_v21 }
 0x994   :  { %3178 = vpow2.f32 %v2344_v19 }
 0x995   :  { %3180 = vrcp.f32 %v1055_v20 }
 0x996   :  { %3182 = vrcp.f32 %v1160_v26 }
 0x99d   :  { %v3177_v23 = vpop.eup %3176 }
 0x99e   :  { %v3179_v27 = vpop.eup %3178  ;;  %v954_v45 = vmul.f32 %v3177_v23, %v3656_v53 }
 0x99f   :  { %v3181_v28 = vpop.eup %3180  ;;  %v1275_v35 = vadd.f32 1.0, %v3179_v27 }
 0x9a0   :  { %v3183_v36 = vpop.eup %3182  ;;  %v1059_v50 = vmul.f32 %v3181_v28, %v3660_v58 }
 0x9a1   :  { %3184 = vrcp.f32 %v1275_v35  ;;  %v1164_v43 = vmul.f32 %v3183_v36, %v3664_v3 }
 0x9ab   :  { %v3185_v40 = vpop.eup %3184 }
 0x9ac   :  { %v1279_v55 = vmul.f32 0.0, %v3185_v40 }
 0x9ee   :  { %v957_v24 = vpop.permute.xlu0 %956 }
 0x9ef   :  { %v959_v25 = vmul.f32 %v3177_v23, %v957_v24 }
 0x9f1   :  { %961 = vrot.lane.b32.xlu0 %v959_v25, %s3392_s2 }
 0x9f2   :  { %v1062_v30 = vpop.permute.xlu1 %1061 }
 0x9f3   :  { %v1064_v34 = vmul.f32 %v3181_v28, %v1062_v30 }
 0x9f5   :  { %1066 = vrot.lane.b32.xlu1 %v1064_v34, %s3392_s2 }
 0x9fe   :  { %v1167_v37 = vpop.permute.xlu0 %1166 }
 0x9ff   :  { %v1169_v38 = vmul.f32 %v3183_v36, %v1167_v37 }
 0xa01   :  { %1171 = vrot.lane.b32.xlu0 %v1169_v38, %s3392_s2 }
 0xa02   :  { %v1282_v41 = vpop.permute.xlu1 %1281 }
 0xa03   :  { %v1284_v44 = vmul.f32 %v3185_v40, %v1282_v41 }
 0xa05   :  { %1286 = vrot.lane.b32.xlu1 %v1284_v44, %s3392_s2 }
 0xa63   :  { %v962_v46 = vpop.permute.xlu0 %961 }
 0xa64   :  { %v3755_v48 = vadd.f32 %v962_v46, %v954_v45 }
 0xa66   :  { %3186 = vtanh.f32 %v3755_v48 }
 0xa67   :  { %v1067_v51 = vpop.permute.xlu1 %1066 }
 0xa68   :  { %v3759_v52 = vadd.f32 %v1067_v51, %v1059_v50 }
 0xa6a   :  { %3188 = vtanh.f32 %v3759_v52 }
 0xa70   :  { %v3187_v39 = vpop.eup %3186 }
 0xa71   :  { %967 = vrot.lane.b32.xlu0 %v3187_v39, %s3399_s11 }
 0xa73   :  { %v1172_v49 = vpop.permute.xlu0 %1171 }
 0xa74   :  { %v3189_v54 = vpop.eup %3188  ;;  %v3764_v53 = vadd.f32 %v1172_v49, %v1164_v43 }
 0xa75   :  { %1072 = vrot.lane.b32.xlu1 %v3189_v54, %s3399_s11 }
 0xa76   :  { %3190 = vtanh.f32 %v3764_v53 }
 0xa77   :  { %v1287_v58 = vpop.permute.xlu1 %1286 }
 0xa78   :  { %v3768_v56 = vadd.f32 %v1287_v58, %v1279_v55 }
 0xa7a   :  { %3192 = vtanh.f32 %v3768_v56 }
 0xa80   :  { %v3191_v60 = vpop.eup %3190 }
 0xa81   :  { %1177 = vrot.lane.b32.xlu0 %v3191_v60, %s3399_s11 }
 0xa84   :  { %v3193_v61 = vpop.eup %3192 }
 0xa85   :  { %1292 = vrot.lane.b32.xlu1 %v3193_v61, %s3399_s11 }
 0xae3   :  { %v968_v3 = vpop.permute.xlu0 %967 }
 0xae4   :  { %v970_v62 = vmul.f32 %v3177_v23, %v968_v3 }
 0xae6   :  { %1297 = vrot.lane.b32.xlu0 %v970_v62, %s3392_s2 }
 0xae7   :  { %v1073_v2 = vpop.permute.xlu1 %1072 }
 0xae8   :  { %v1075_v31 = vmul.f32 %v3181_v28, %v1073_v2 }
 0xaea   :  { %1402 = vrot.lane.b32.xlu0 %v1075_v31, %s3392_s2  ;;  %1301 = vrot.lane.b32.xlu1 %v1075_v31, %s3399_s11 }
 0xaf3   :  { %v1178_v4 = vpop.permute.xlu0 %1177 }
 0xaf4   :  { %v1180_v6 = vmul.f32 %v3183_v36, %v1178_v4 }
 0xaf6   :  { %1507 = vrot.lane.b32.xlu0 %v1180_v6, %s3392_s2  ;;  %1406 = vrot.lane.b32.xlu1 %v1180_v6, %s3399_s11 }
 0xaf7   :  { %v1293_v7 = vpop.permute.xlu1 %1292 }
 0xaf8   :  { %v1295_v9 = vmul.f32 %v3185_v40, %v1293_v7 }
 0xafa   :  { %1511 = vrot.lane.b32.xlu1 %v1295_v9, %s3399_s11 }
 0xb58   :  { %v3779_v10 = vpop.permute.xlu0 %1297 }
 0xb5c   :  { %v1302_v12 = vpop.permute.xlu1 %1301  ;;  %v1403_v14 = vpop.permute.xlu0 %1402 }
 0xb5d   :  { %v1304_v13 = vsel %vm169_vm1, %v3779_v10, %v1302_v12 }
 0xb5e   :  { %2745 = vmatmul.mubr.msk.f32.vlgmr.msra.gmra.mrb[10].mxu1 %vm184_vm2, %v1304_v13 }
 0xb5f   :  { %3029 = vmatpush3.bf16.msra.mxu1 %v3682_v33  ;;  %2782 = vmatprep.mubr.msk.f32.mxu1 %vm3397_vm0, %v3398_v1 }
 0xb60   :  { %3030 = vmatprep.subr.bf16.mxu1 %v3396_v0 }
 0xb63   :  { %3032 = vmatpush3.bf16.msra.mxu1 %v3691_v29 }
 0xb64   :  { %3033 = vmatprep.subr.bf16.mxu1 %v3396_v0 }
 0xb67   :  { %3035 = vmatpush3.bf16.msra.mxu1 %v3699_v42 }
 0xb68   :  { %v1407_v15 = vpop.permute.xlu1 %1406  ;;  %3036 = vmatprep.subr.bf16.mxu1 %v3396_v0  ;;  %v1508_v17 = vpop.permute.xlu0 %1507 }
 0xb69   :  { %v1409_v16 = vsel %vm169_vm1, %v1403_v14, %v1407_v15 }
 0xb6a   :  { %2764 = vmatmul.mubr.msk.f32.vlgmr.msra.gmra.mrb[12].mxu0 %vm184_vm2, %v1409_v16 }
 0xb6b   :  { %3038 = vmatpush3.bf16.msra.mxu1 %v3705_v47  ;;  %3041 = vmatpush3.bf16.msra.mxu0 %v3603_v57 }
 0xb6c   :  { %v1512_v18 = vpop.permute.xlu1 %1511  ;;  %3042 = vmatprep.subr.bf16.mxu0 %v3396_v0  ;;  %3051 = vmatprep.subr.bf16.mxu1 %v3396_v0 }
 0xb6d   :  { %v1514_v19 = vsel %vm169_vm1, %v1508_v17, %v1512_v18  ;;  %2801 = vmatprep.mubr.msk.f32.mxu0 %vm3397_vm0, %v3398_v1 }
 0xb6e   :  { %2783 = vmatmul.mubr.msk.f32.vlgmr.msra.gmra.mrb[12].mxu1 %vm184_vm2, %v1514_v19 }
 0xb6f   :  { %3044 = vmatpush3.bf16.msra.mxu0 %v3608_v63  ;;  %3053 = vmatpush3.bf16.msra.mxu1 %v3682_v33 }
 0xb70   :  { %3045 = vmatprep.subr.bf16.mxu0 %v3396_v0  ;;  %3054 = vmatprep.subr.bf16.mxu1 %v3396_v0 }
 0xb71   :  { %2820 = vmatprep.mubr.msk.f32.mxu1 %vm3397_vm0, %v3398_v1 }
 0xb73   :  { %3047 = vmatpush3.bf16.msra.mxu0 %v3616_v8  ;;  %3056 = vmatpush3.bf16.msra.mxu1 %v3691_v29 }
 0xb74   :  { %3048 = vmatprep.subr.bf16.mxu0 %v3396_v0  ;;  %3057 = vmatprep.subr.bf16.mxu1 %v3396_v0 }
 0xb77   :  { %3050 = vmatpush3.bf16.msra.mxu0 %v3622_v11  ;;  %3059 = vmatpush3.bf16.msra.mxu1 %v3699_v42 }
 0xb78   :  { %3060 = vmatprep.subr.bf16.mxu1 %v3396_v0  ;;  %3063 = vmatprep.subr.bf16.mxu0 %v3396_v0 }
 0xb7b   :  { %3062 = vmatpush3.bf16.msra.mxu1 %v3705_v47 }
 0xb7c   :  { %3075 = vmatprep.subr.bf16.mxu1 %v3396_v0 }
 0xc31   :  { %v1374_v57 = vpop.f32.mrb[10].mxu1 }
 0xc32   :  { %v1375_v63 = vadd.f32 %v3579_v5, %v1374_v57  ;;  %v2746_v8 = vpop.f32.mrb[11].mxu1 }
 0xc34   :  { %3194 = vtanh.f32 %v1375_v63  ;;  %v2346_v5 = vmul.f32 -1.442695, %v1375_v63 }
 0xc3d   :  { %v1479_v20 = vpop.f32.mrb[12].mxu0 }
 0xc3e   :  { %v3195_v21 = vpop.eup %3194  ;;  %v1480_v23 = vadd.f32 %v3647_v22, %v1479_v20  ;;  %v2765_v11 = vpop.f32.mrb[13].mxu0 }
 0xc3f   :  { %1387 = vrot.lane.b32.xlu0 %v3195_v21, %s3399_s11 }
 0xc40   :  { %3196 = vtanh.f32 %v1480_v23  ;;  %v2348_v30 = vmul.f32 -1.442695, %v1480_v23 }
 0xc41   :  { %v1584_v24 = vpop.f32.mrb[12].mxu1 }
 0xc42   :  { %v1585_v25 = vadd.f32 %v3745_v32, %v1584_v24  ;;  %v2784_v26 = vpop.f32.mrb[13].mxu1 }
 0xc44   :  { %3198 = vtanh.f32 %v1585_v25  ;;  %v2350_v35 = vmul.f32 -1.442695, %v1585_v25 }
 0xc45   :  { %3200 = vpow2.f32 %v2346_v5 }
 0xc46   :  { %3202 = vpow2.f32 %v2348_v30 }
 0xc47   :  { %3204 = vpow2.f32 %v2350_v35 }
 0xc4a   :  { %v3197_v27 = vpop.eup %3196 }
 0xc4b   :  { %1492 = vrot.lane.b32.xlu1 %v3197_v27, %s3399_s11 }
 0xc4e   :  { %v3199_v28 = vpop.eup %3198 }
 0xc4f   :  { %1597 = vrot.lane.b32.xlu0 %v3199_v28, %s3399_s11  ;;  %v3201_v34 = vpop.eup %3200 }
 0xc50   :  { %v1381_v36 = vadd.f32 1.0, %v3201_v34  ;;  %v3203_v37 = vpop.eup %3202 }
 0xc51   :  { %v1486_v38 = vadd.f32 1.0, %v3203_v37  ;;  %v3205_v40 = vpop.eup %3204 }
 0xc52   :  { %3206 = vrcp.f32 %v1381_v36  ;;  %v1591_v46 = vadd.f32 1.0, %v3205_v40 }
 0xc53   :  { %3208 = vrcp.f32 %v1486_v38 }
 0xc54   :  { %3210 = vrcp.f32 %v1591_v46 }
 0xc5c   :  { %v3207_v41 = vpop.eup %3206 }
 0xc5d   :  { %v3209_v50 = vpop.eup %3208  ;;  %v1385_v55 = vmul.f32 %v3207_v41, %v3759_v52 }
 0xc5e   :  { %v3211_v43 = vpop.eup %3210  ;;  %v1490_v61 = vmul.f32 %v3209_v50, %v3764_v53 }
 0xc5f   :  { %v1595_v31 = vmul.f32 %v3211_v43, %v3768_v56 }
 0xcb1   :  { %v1388_v44 = vpop.permute.xlu0 %1387 }
 0xcb2   :  { %v1390_v45 = vmul.f32 %v3207_v41, %v1388_v44 }
 0xcb4   :  { %1392 = vrot.lane.b32.xlu1 %v1390_v45, %s3392_s2 }
 0xcbd   :  { %v1493_v51 = vpop.permute.xlu1 %1492 }
 0xcbe   :  { %v1495_v39 = vmul.f32 %v3209_v50, %v1493_v51 }
 0xcc0   :  { %1497 = vrot.lane.b32.xlu0 %v1495_v39, %s3392_s2 }
 0xcc1   :  { %v1598_v49 = vpop.permute.xlu0 %1597 }
 0xcc2   :  { %v1600_v54 = vmul.f32 %v3211_v43, %v1598_v49 }
 0xcc4   :  { %1602 = vrot.lane.b32.xlu1 %v1600_v54, %s3392_s2 }
 0xd26   :  { %v1393_v58 = vpop.permute.xlu1 %1392 }
 0xd27   :  { %v3828_v60 = vadd.f32 %v1393_v58, %v1385_v55 }
 0xd29   :  { %3212 = vtanh.f32 %v3828_v60 }
 0xd32   :  { %v1498_v3 = vpop.permute.xlu0 %1497 }
 0xd33   :  { %v3213_v62 = vpop.eup %3212  ;;  %v3832_v2 = vadd.f32 %v1498_v3, %v1490_v61 }
 0xd34   :  { %1398 = vrot.lane.b32.xlu0 %v3213_v62, %s3399_s11 }
 0xd35   :  { %3214 = vtanh.f32 %v3832_v2 }
 0xd36   :  { %v1603_v4 = vpop.permute.xlu1 %1602 }
 0xd37   :  { %v3837_v6 = vadd.f32 %v1603_v4, %v1595_v31 }
 0xd39   :  { %3216 = vtanh.f32 %v3837_v6 }
 0xd3f   :  { %v3215_v52 = vpop.eup %3214 }
 0xd40   :  { %1503 = vrot.lane.b32.xlu1 %v3215_v52, %s3399_s11 }
 0xd43   :  { %v3217_v7 = vpop.eup %3216 }
 0xd44   :  { %1608 = vrot.lane.b32.xlu0 %v3217_v7, %s3399_s11 }
 0xda6   :  { %v1399_v53 = vpop.permute.xlu0 %1398 }
 0xda7   :  { %v3842_v9 = vmul.f32 %v3207_v41, %v1399_v53 }
 0xda9   :  { %1613 = vrot.lane.b32.xlu1 %v3842_v9, %s3392_s2 }
 0xdb2   :  { %v1504_v12 = vpop.permute.xlu1 %1503 }
 0xdb3   :  { %v1506_v13 = vmul.f32 %v3209_v50, %v1504_v12 }
 0xdb5   :  { %1718 = vrot.lane.b32.xlu1 %v1506_v13, %s3392_s2  ;;  %1617 = vrot.lane.b32.xlu0 %v1506_v13, %s3399_s11 }
 0xdb6   :  { %v1609_v56 = vpop.permute.xlu0 %1608 }
 0xdb7   :  { %v1611_v14 = vmul.f32 %v3211_v43, %v1609_v56  ;;  %v1945_v56 = vld [vmem:[#allocation7 + $0x8] sm:$0xff] }
 0xdb9   :  { %1722 = vrot.lane.b32.xlu0 %v1611_v14, %s3399_s11  ;;  %v1946_v14 = vld [vmem:[#allocation7 + $0x10] sm:$0xff] }
 0xe1b   :  { %v1614_v15 = vpop.permute.xlu1 %1613 }
 0xe27   :  { %v1618_v16 = vpop.permute.xlu0 %1617  ;;  %v1719_v18 = vpop.permute.xlu1 %1718 }
 0xe28   :  { %v1620_v17 = vsel %vm169_vm1, %v1614_v15, %v1618_v16  ;;  %v1947_v16 = vld [vmem:[#allocation7 + $0x18] sm:$0xff] }
 0xe29   :  { %2802 = vmatmul.mubr.msk.f32.vlgmr.msra.gmra.mrb[14].mxu0 %vm184_vm2, %v1620_v17  ;;  %v3079_v17 = vpack.c.bf16 %v1947_v16, %v1946_v14 }
 0xe2a   :  { %3065 = vmatpush3.bf16.msra.mxu0 %v3682_v33  ;;  %2839 = vmatprep.mubr.msk.f32.mxu0 %vm3397_vm0, %v3398_v1 }
 0xe2b   :  { %v1723_v19 = vpop.permute.xlu0 %1722  ;;  %3066 = vmatprep.subr.bf16.mxu0 %v3396_v0 }
 0xe2c   :  { %v1725_v57 = vsel %vm169_vm1, %v1719_v18, %v1723_v19  ;;  %v1948_v18 = vld [vmem:[#allocation7 + $0x20] sm:$0xff]  ;;  %v1949_v19 = vld [vmem:[#allocation7 + $0x28] sm:$0xff] }
 0xe2d   :  { %2821 = vmatmul.mubr.msk.f32.vlgmr.msra.gmra.mrb[14].mxu1 %vm184_vm2, %v1725_v57  ;;  %v3082_v57 = vpack.c.bf16 %v1949_v19, %v1948_v18 }
 0xe2e   :  { %3068 = vmatpush3.bf16.msra.mxu0 %v3691_v29  ;;  %2858 = vmatprep.mubr.msk.f32.mxu1 %vm3397_vm0, %v3398_v1 }
 0xe2f   :  { %3069 = vmatprep.subr.bf16.mxu0 %v3396_v0 }
 0xe32   :  { %3071 = vmatpush3.bf16.msra.mxu0 %v3699_v42 }
 0xe33   :  { %3072 = vmatprep.subr.bf16.mxu0 %v3396_v0 }
 0xe36   :  { %3074 = vmatpush3.bf16.msra.mxu0 %v3705_v47 }
 0xe37   :  { %3087 = vmatprep.subr.bf16.mxu0 %v3396_v0 }
 0xefc   :  { %v1690_v33 = vpop.f32.mrb[14].mxu0 }
 0xefd   :  { %v1691_v63 = vadd.f32 %v3647_v22, %v1690_v33  ;;  %v2803_v8 = vpop.f32.mrb[15].mxu0  ;;  %v1950_v33 = vld [vmem:[#allocation7 + $0x30] sm:$0xff] }
 0xeff   :  { %3218 = vtanh.f32 %v1691_v63  ;;  %v2352_v11 = vmul.f32 -1.442695, %v1691_v63  ;;  %v1951_v63 = vld [vmem:[#allocation7 + $0x38] sm:$0xff] }
 0xf00   :  { %v1795_v20 = vpop.f32.mrb[14].mxu1 }
 0xf01   :  { %v1796_v29 = vadd.f32 %v3745_v32, %v1795_v20  ;;  %v2822_v21 = vpop.f32.mrb[15].mxu1  ;;  %v2315_v20 = vld [vmem:[%s3987_s6] ss:$0 sm:$0xff] }
 0xf02   :  { %v165_v21 = vadd.f32 %v2315_v20, %v3555_v59  ;;  %v2358_v59 = vld [vmem:[%s3987_s6 + $0x1] ss:$0 sm:$0xff] }
 0xf03   :  { %3220 = vtanh.f32 %v1796_v29  ;;  %v2354_v47 = vmul.f32 -1.442695, %v1796_v29  ;;  %v3085_v29 = vpack.c.bf16 %v1951_v63, %v1950_v33 }
 0xf04   :  { %3222 = vpow2.f32 %v2352_v11 }
 0xf05   :  { %3224 = vpow2.f32 %v2354_v47 }
 0xf09   :  { %v3219_v23 = vpop.eup %3218 }
 0xf0a   :  { %1703 = vrot.lane.b32.xlu1 %v3219_v23, %s3399_s11 }
 0xf0d   :  { %v3221_v42 = vpop.eup %3220 }
 0xf0e   :  { %1808 = vrot.lane.b32.xlu0 %v3221_v42, %s3399_s11  ;;  %v3223_v24 = vpop.eup %3222 }
 0xf0f   :  { %v1697_v25 = vadd.f32 1.0, %v3223_v24  ;;  %v3225_v22 = vpop.eup %3224 }
 0xf10   :  { %v1802_v26 = vadd.f32 1.0, %v3225_v22 }
 0xf11   :  { %3226 = vrcp.f32 %v1697_v25 }
 0xf12   :  { %3228 = vrcp.f32 %v1802_v26 }
 0xf1b   :  { %v3227_v27 = vpop.eup %3226 }
 0xf1c   :  { %v3229_v30 = vpop.eup %3228  ;;  %v1701_v36 = vmul.f32 %v3227_v27, %v3832_v2 }
 0xf1d   :  { %v1806_v40 = vmul.f32 %v3229_v30, %v3837_v6 }
 0xf7c   :  { %v1704_v28 = vpop.permute.xlu1 %1703 }
 0xf7d   :  { %v1706_v5 = vmul.f32 %v3227_v27, %v1704_v28 }
 0xf7f   :  { %1708 = vrot.lane.b32.xlu1 %v1706_v5, %s3392_s2 }
 0xf80   :  { %v1809_v34 = vpop.permute.xlu0 %1808 }
 0xf81   :  { %v1811_v35 = vmul.f32 %v3229_v30, %v1809_v34 }
 0xf83   :  { %1813 = vrot.lane.b32.xlu0 %v1811_v35, %s3392_s2 }
 0xff1   :  { %v1709_v37 = vpop.permute.xlu1 %1708 }
 0xff2   :  { %v3872_v38 = vadd.f32 %v1709_v37, %v1701_v36  ;;  %v2057_v36 = vld [vmem:[#allocation7 + $0x40] sm:$0xff]  ;;  %v2058_v37 = vld [vmem:[#allocation7 + $0x48] sm:$0xff] }
 0xff4   :  { %3230 = vtanh.f32 %v3872_v38 }
 0xff5   :  { %v1814_v41 = vpop.permute.xlu0 %1813 }
 0xff6   :  { %v1816_v44 = vadd.f32 %v1814_v41, %v1806_v40  ;;  %v3088_v40 = vpack.c.bf16 %v2058_v37, %v2057_v36  ;;  %v2059_v41 = vld [vmem:[#allocation7 + $0x50] sm:$0xff] }
 0xff8   :  { %3232 = vtanh.f32 %v1816_v44 }
 0xffe   :  { %v3231_v45 = vpop.eup %3230 }
 0xfff   :  { %1714 = vrot.lane.b32.xlu1 %v3231_v45, %s3399_s11 }
0x1002   :  { %v3233_v46 = vpop.eup %3232 }
0x1003   :  { %1819 = vrot.lane.b32.xlu0 %v3233_v46, %s3399_s11 }
0x1071   :  { %v1715_v50 = vpop.permute.xlu1 %1714 }
0x1072   :  { %v3878_v51 = vmul.f32 %v3227_v27, %v1715_v50 }
0x1074   :  { %1824 = vrot.lane.b32.xlu1 %v3878_v51, %s3392_s2 }
0x1075   :  { %v1820_v39 = vpop.permute.xlu0 %1819 }
0x1076   :  { %v1822_v43 = vmul.f32 %v3229_v30, %v1820_v39 }
0x1078   :  { %1828 = vrot.lane.b32.xlu0 %v1822_v43, %s3399_s11  ;;  %v2360_v43 = vld [vmem:[%s3987_s6 + $0x3] ss:$0 sm:$0xff] }
0x10e6   :  { %v1825_v49 = vpop.permute.xlu1 %1824 }
0x10ea   :  { %v1829_v54 = vpop.permute.xlu0 %1828 }
0x10eb   :  { %v1831_v55 = vsel %vm169_vm1, %v1825_v49, %v1829_v54 }
0x10ec   :  { %2840 = vmatmul.mubr.msk.f32.vlgmr.msra.gmra.mrb[16].mxu0 %vm184_vm2, %v1831_v55 }
0x10ed   :  { %2869 = vmatprep.mubr.msk.f32.mxu0 %vm3397_vm0, %v3398_v1  ;;  %3089 = vmatpush3.bf16.msra.mxu0 %v3088_v40 }
0x10ee   :  { %3090 = vmatprep.subr.bf16.mxu0 %v3396_v0 }
0x11bf   :  { %v1901_v58 = vpop.f32.mrb[16].mxu0 }
0x11c0   :  { %v1902_v61 = vadd.f32 %v3745_v32, %v1901_v58  ;;  %v2841_v3 = vpop.f32.mrb[17].mxu0  ;;  %v1944_v32 = vld [vmem:[#allocation7] sm:$0xff]  ;;  %v2362_v58 = vld [vmem:[%s3987_s6 + $0x4] ss:$0 sm:$0xff] }
0x11c1   :  { %v3076_v15 = vpack.c.bf16 %v1945_v56, %v1944_v32  ;;  %v2166_v32 = vld [vmem:[#allocation7 + $0x90] sm:$0xff]  ;;  %v2167_v56 = vld [vmem:[#allocation7 + $0x98] sm:$0xff] }
0x11c2   :  { %3234 = vtanh.f32 %v1902_v61  ;;  %v2356_v2 = vmul.f32 -1.442695, %v1902_v61  ;;  %v3097_v14 = vpack.c.bf16 %v2167_v56, %v2166_v32 }
0x11c3   :  { %3077 = vmatpush3.bf16.msra.mxu1 %v3076_v15 }
0x11c4   :  { %3236 = vpow2.f32 %v2356_v2  ;;  %3078 = vmatprep.subr.bf16.mxu1 %v3396_v0 }
0x11c7   :  { %3080 = vmatpush3.bf16.msra.mxu1 %v3079_v17 }
0x11c8   :  { %3081 = vmatprep.subr.bf16.mxu1 %v3396_v0 }
0x11cb   :  { %3083 = vmatpush3.bf16.msra.mxu1 %v3082_v57 }
0x11cc   :  { %v3235_v62 = vpop.eup %3234  ;;  %3084 = vmatprep.subr.bf16.mxu1 %v3396_v0 }
0x11cd   :  { %1914 = vrot.lane.b32.xlu1 %v3235_v62, %s3399_s11 }
0x11ce   :  { %v3237_v31 = vpop.eup %3236 }
0x11cf   :  { %v1908_v4 = vadd.f32 1.0, %v3237_v31  ;;  %3086 = vmatpush3.bf16.msra.mxu1 %v3085_v29 }
0x11d1   :  { %3238 = vrcp.f32 %v1908_v4 }
0x11db   :  { %v3239_v6 = vpop.eup %3238 }
0x11dc   :  { %v1912_v53 = vmul.f32 %v3239_v6, %v1816_v44  ;;  %v2060_v44 = vld [vmem:[#allocation7 + $0x58] sm:$0xff] }
0x11dd   :  { %v3091_v45 = vpack.c.bf16 %v2060_v44, %v2059_v41 }
0x11df   :  { %3092 = vmatpush3.bf16.msra.mxu0 %v3091_v45 }
0x11e0   :  { %3093 = vmatprep.subr.bf16.mxu0 %v3396_v0 }
0x123f   :  { %v1915_v52 = vpop.permute.xlu1 %1914 }
0x1240   :  { %v1917_v7 = vmul.f32 %v3239_v6, %v1915_v52 }
0x1242   :  { %1919 = vrot.lane.b32.xlu0 %v1917_v7, %s3392_s2 }
0x12b4   :  { %v1920_v12 = vpop.permute.xlu0 %1919 }
0x12b5   :  { %v3890_v13 = vadd.f32 %v1920_v12, %v1912_v53  ;;  %v2165_v53 = vld [vmem:[#allocation7 + $0x88] sm:$0xff] }
0x12b7   :  { %3240 = vtanh.f32 %v3890_v13 }
0x12c1   :  { %v3241_v8 = vpop.eup %3240 }
0x12c2   :  { %1925 = vrot.lane.b32.xlu1 %v3241_v8, %s3399_s11 }
0x12c6   :  { %1940 = vrot.lane.b32.xlu1 %v165_v21, %s3392_s2 }
0x1334   :  { %v1926_v23 = vpop.permute.xlu1 %1925 }
0x1335   :  { %v3902_v42 = vmul.f32 %v3239_v6, %v1926_v23 }
0x1337   :  { %1936 = vrot.lane.b32.xlu0 %v3902_v42, %s3392_s2 }
0x1338   :  { %v1941_v11 = vpop.permute.xlu1 %1940 }
0x13a9   :  { %v1937_v47 = vpop.permute.xlu0 %1936 }
0x13aa   :  { %v1943_v24 = vsel %vm169_vm1, %v1937_v47, %v1941_v11 }
0x13ab   :  { %2859 = vmatmul.mubr.msk.f32.vlgmr.msra.gmra.mrb[16].mxu1 %vm184_vm2, %v1943_v24 }
0x147e   :  { %v2021_v25 = vpop.f32.mrb[16].mxu1 }
0x147f   :  { %v2029_v22 = vadd.f32 %v2358_v59, %v2021_v25  ;;  %v2860_v26 = vpop.f32.mrb[17].mxu1 }
0x1481   :  { %v2031_v27 = vsel %vm2030_vm5, %v2029_v22, 0.0 }
0x1482   :  { %2032 = vadd.xlane.f32.xlu0 %v2031_v27 }
0x150f   :  { %v2033_v28 = vpop.xlane.xlu0 %2032 }
0x1510   :  { %v2035_v5 = vmul.f32 0.03125, %v2033_v28 }
0x1512   :  { %v2036_v30 = vsub.f32 %v2029_v22, %v2035_v5 }
0x1514   :  { %v2037_v34 = vmul.f32 %v2036_v30, %v2036_v30 }
0x1516   :  { %v2038_v35 = vsel %vm2030_vm5, %v2037_v34, 0.0 }
0x1517   :  { %2039 = vadd.xlane.f32.xlu1 %v2038_v35 }
0x1528   :  { %2247 = vrot.lane.b32.xlu1 %v3842_v9, %s3399_s11 }
0x152c   :  { %2250 = vrot.lane.b32.xlu1 %v3878_v51, %s3400_s28 }
0x1530   :  { %2258 = vrot.lane.b32.xlu1 %v3872_v38, %s3392_s2  ;;  %v2359_v38 = vld [vmem:[%s3987_s6 + $0x2] ss:$0 sm:$0xff] }
0x15a4   :  { %v2040_v9 = vpop.xlane.xlu1 %2039 }
0x15a5   :  { %v2041_v46 = vmul.f32 0.03125, %v2040_v9 }
0x15a7   :  { %v2042_v50 = vadd.f32 1e-05, %v2041_v46 }
0x15a8   :  { %v2248_v15 = vpop.permute.xlu1 %2247 }
0x15a9   :  { %3242 = vrsqrt.f32 %v2042_v50 }
0x15ac   :  { %v2251_v17 = vpop.permute.xlu1 %2250 }
0x15b0   :  { %v2259_v63 = vpop.permute.xlu1 %2258 }
0x15b3   :  { %v3243_v51 = vpop.eup %3242 }
0x15b4   :  { %v2044_v39 = vmul.f32 %v3243_v51, %v2036_v30 }
0x15b6   :  { %v2049_v49 = vmul.f32 %v2359_v38, %v2044_v39 }
0x15b8   :  { %v2054_v54 = vadd.f32 %v2360_v43, %v2049_v49 }
0x15ba   :  { %v2055_v55 = vmax.f32 %v2054_v54, 0.0 }
0x15bc   :  { %2870 = vmatmul.mubr.msk.f32.vlgmr.msra.gmra.mrb[18].mxu0 %vm169_vm1, %v2055_v55 }
0x15bd   :  { %2880 = vmatprep.mubr.msk.f32.mxu0 %vm3397_vm0, %v3398_v1  ;;  %v2164_v1 = vld [vmem:[#allocation7 + $0x80] sm:$0xff] }
0x15be   :  { %v3094_v12 = vpack.c.bf16 %v2165_v53, %v2164_v1 }
0x15c0   :  { %3095 = vmatpush3.bf16.msra.mxu0 %v3094_v12 }
0x15c1   :  { %3096 = vmatprep.subr.bf16.mxu0 %v3396_v0 }
0x15c4   :  { %3098 = vmatpush3.bf16.msra.mxu0 %v3097_v14 }
0x168f   :  { %v2130_v61 = vpop.f32.mrb[18].mxu0 }
0x1690   :  { %v2138_v3 = vadd.f32 %v2362_v58, %v2130_v61  ;;  %v2871_v62 = vpop.f32.mrb[19].mxu0 }
0x1692   :  { %v2139_v2 = vsel %vm2030_vm5, %v2138_v3, 0.0 }
0x1693   :  { %2140 = vadd.xlane.f32.xlu0 %v2139_v2 }
0x1720   :  { %v2141_v31 = vpop.xlane.xlu0 %2140 }
0x1721   :  { %v2142_v4 = vmul.f32 0.03125, %v2141_v31 }
0x1723   :  { %v2143_v6 = vsub.f32 %v2138_v3, %v2142_v4 }
0x1725   :  { %v2144_v52 = vmul.f32 %v2143_v6, %v2143_v6 }
0x1727   :  { %v2145_v7 = vsel %vm2030_vm5, %v2144_v52, 0.0 }
0x1728   :  { %2146 = vadd.xlane.f32.xlu0 %v2145_v7 }
0x173e   :  { %2254 = vrot.lane.b32.xlu0 %v3755_v48, %s3400_s28  ;;  %v2265_v48 = vsel %vm169_vm1, %v3779_v10, %v2248_v15  ;;  %v2363_v10 = vld [vmem:[%s3987_s6 + $0x5] ss:$0 sm:$0xff] }
0x173f   :  { %v2266_v33 = vsel %vm184_vm2, %v2265_v48, %v2251_v17 }
0x1740   :  { %v2268_v20 = vsel %vm2267_vm6, %v2266_v33, %v3902_v42 }
0x1742   :  { %2262 = vrot.lane.b32.xlu0 %v3890_v13, %s3399_s11 }
0x17b5   :  { %v2147_v16 = vpop.xlane.xlu0 %2146 }
0x17b6   :  { %v2148_v18 = vmul.f32 0.03125, %v2147_v16 }
0x17b8   :  { %v2149_v19 = vadd.f32 1e-05, %v2148_v18 }
0x17b9   :  { %v2255_v57 = vpop.permute.xlu0 %2254 }
0x17ba   :  { %3244 = vrsqrt.f32 %v2149_v19  ;;  %v2269_v13 = vsel %vm169_vm1, %v2255_v57, %v3828_v60  ;;  %v2364_v60 = vld [vmem:[%s3987_s6 + $0x6] ss:$0 sm:$0xff] }
0x17bb   :  { %v2270_v0 = vsel %vm184_vm2, %v2269_v13, %v2259_v63 }
0x17bd   :  { %v2263_v8 = vpop.permute.xlu0 %2262 }
0x17be   :  { %v2271_v29 = vsel %vm2267_vm6, %v2270_v0, %v2263_v8 }
0x17bf   :  { %v2274_v21 = vcombine.low %v2268_v20, %v2271_v29 }
0x17c1   :  { %2367 = vst.sshfl [vmem:[#allocation10] sm:$0x33 pattern:$0x76325410] %v2274_v21 }
0x17c4   :  { %v3245_v23 = vpop.eup %3244 }
0x17c5   :  { %v2151_v11 = vmul.f32 %v3245_v23, %v2143_v6 }
0x17c7   :  { %v2156_v47 = vmul.f32 %v2363_v10, %v2151_v11 }
0x17c9   :  { %v2161_v24 = vadd.f32 %v2364_v60, %v2156_v47 }
0x17cb   :  { %v2162_v59 = vmax.f32 %v2161_v24, 0.0 }
0x17cd   :  { %2881 = vmatmul.mubr.msk.f32.vlgmr.msra.gmra.mrb[20].mxu0 %vm169_vm1, %v2162_v59 }
0x17ce   :  { %3345 = shalt.err (!%p3342_p8)
}
0x17cf   :  { %s3346_s19 = scalar_lea.hbm %s3988_s7, 64 }
0x17d0   :  { %p3347_p9 = scmp.ne.s32.totalorder %s3988_s7, %s3346_s19  ;;  %p3350_p10 = scmp.lt.u32.totalorder %s3346_s19, %s3988_s7 }
0x17d2   :  { %p3352_p11 = pnand %p3350_p10, %p3347_p9 }
0x17d4   :  { %3355 = shalt.err (!%p3352_p11)
}
0x17d5   :  { %2293 = dma.vmem_to_hbm [thread:$0]  %s2291_s1, 64, %s3988_s7, [#allocation4]   ;;  %v2365_v42 = vld [vmem:[%s3987_s6 + $0x7] ss:$0 sm:$0xff] }
0x17d6   :  { %s3402_s26 = smov [#allocation11]  }
0x17d7   :  { %s2300_s27 = sshll.u32 %s3402_s26, 4  ;;  %s2301_s27 = int_to_ptr.vmem [resolvable:$true] %s2300_s27 }
0x17d8   :  { %s3356_s29 = scalar_lea.vmem %s2301_s27, 32  ;;  %p3361_p13 = scmp.lt.s32.totalorder %s2301_s27, %s2301_s27 }
0x17d9   :  { %p3357_p12 = scmp.ne.s32.totalorder %s2301_s27, %s3356_s29  ;;  %p3362_p0 = scmp.lt.s32.totalorder %s3356_s29, %s3356_s29 }
0x17db   :  { %p3363_p1 = por %p3362_p0, %p3361_p13 }
0x17dd   :  { %p3364_p2 = pnand %p3363_p1, %p3357_p12 }
0x18a0   :  { %v2242_v25 = vpop.f32.mrb[20].mxu0 }
0x18a1   :  { %v2243_v22 = vadd.f32 %v2365_v42, %v2242_v25  ;;  %v2882_v26 = vpop.f32.mrb[21].mxu0 }
0x18a3   :  { %2246 = vst [vmem:[#allocation11] sm:$0x3] %v2243_v22 }
0x18a4   :  { %3367 = shalt.err (!%p3364_p2)
}
0x18a5   :  { %s3368_s30 = scalar_lea.hbm %s3989_s8, 32 }
0x18a6   :  { %p3369_p3 = scmp.ne.s32.totalorder %s3989_s8, %s3368_s30  ;;  %p3372_p4 = scmp.lt.u32.totalorder %s3368_s30, %s3989_s8 }
0x18a8   :  { %p3374_p5 = pnand %p3372_p4, %p3369_p3 }
0x18aa   :  { %3377 = shalt.err (!%p3374_p5)
}
0x18ab   :  { %2303 = dma.vmem_to_hbm [thread:$0]  %s2301_s27, 32, %s3989_s8, [#allocation12]  }
0x18ac   :  { %3384 = dma.done.wait [#allocation4], 64  }
0x18ad   :  { %3385 = vsyncadd [#allocation4], 4294967232 }
0x18ae   :  { %3386 = dma.done.wait [#allocation12], 32  }
0x18af   :  { %3387 = vsyncadd [#allocation12], 4294967264 }
0x18b0   :  { %2310 = vsyncpa [#allocation3], 1 }
0x18b1   :  { %2311 = vsyncpa [#allocation6], 1 }
0x18b2   :  { %2312 = vsyncpa [#allocation9], 1 }
0x18b3   :  { %2313 = vsyncpa [#allocation4], 1 }
0x18b4   :  { %2314 = vsyncpa [#allocation12], 1 }

</bundles_post_ra>
